<compile_context>
chip_gen: v6e
topology: v6e:2x2x1
jax: 0.10.0
libtpu: 0.0.40
codegen_flags: <defaults>
</compile_context>

<pallas_src>
import numpy as np
import jax
import jax.numpy as jnp
from jax import lax
from jax.experimental import pallas as pl
from jax.experimental.pallas import tpu as pltpu

BN_EPS = 1e-5


def _build_banded_weights(dw_w, dw_b, pw_w, pw_b, H, W, band_dtype):
    """Fold depthwise(3x3x3) + pointwise(1x1x1) into one banded matmul weight.

    Returns
      w_cat  : (3*H*W*Cin, H*W*Cout)  column-block kd multiplies the input
                                      depth plane d+kd-1; spatial boundary
                                      zeros are folded into the band.
      b_line : (1, H*W*Cout)          effective bias, lane-dense.
    """
    Cin = dw_w.shape[0]
    Cout = pw_w.shape[0]
    dw = np.asarray(dw_w, np.float32)[:, 0]            # (Cin, 3, 3, 3)
    pw = np.asarray(pw_w, np.float32)[:, :, 0, 0, 0]   # (Cout, Cin)
    # w_eff[kd, kh, kw, c, co] = dw[c, kd, kh, kw] * pw[co, c]
    w_eff = np.einsum('cdef,oc->defco', dw, pw)
    # Unpadded spatial band: source (h', w') = (h+kh-1, w+kw-1) kept only when
    # it lies inside the unpadded H x W grid (zero-padding handled implicitly).
    band = np.zeros((3, H, W, Cin, H, W, Cout), np.float32)
    for kh in range(3):
        for kw in range(3):
            for h in range(H):
                hs = h + kh - 1
                if hs < 0 or hs >= H:
                    continue
                for w in range(W):
                    ws = w + kw - 1
                    if ws < 0 or ws >= W:
                        continue
                    band[:, hs, ws, :, h, w, :] = w_eff[:, kh, kw]
    w_cat = jnp.asarray(band.reshape(3 * H * W * Cin, H * W * Cout),
                        dtype=band_dtype)
    b_eff = np.asarray(pw_b, np.float32) + pw @ np.asarray(dw_b, np.float32)
    b_line = jnp.asarray(np.tile(b_eff, H * W)[None, :], dtype=jnp.float32)
    return w_cat, b_line


def dwsep_block_forward(x_ncdhw, dw_w, dw_b, pw_w, pw_b, gamma, beta,
                        eps=BN_EPS, band_dtype=jnp.float32):
    """Forward pass of DepthwiseSeparableConvBlock3D.

    x_ncdhw : (N, Cin, D, H, W) float32   (PyTorch layout)
    dw_w    : (Cin, 1, 3, 3, 3)           depthwise conv weight
    dw_b    : (Cin,)                      depthwise conv bias
    pw_w    : (Cout, Cin, 1, 1, 1)        pointwise conv weight
    pw_b    : (Cout,)                     pointwise conv bias
    gamma, beta : (Cout,)                 BatchNorm affine parameters
    band_dtype  : jnp.float32 (exact) or jnp.bfloat16 (v6e/v7x perf path)
    returns : (N, Cout, D, H, W) float32
    """
    N, Cin, D, H, W = x_ncdhw.shape
    Cout = pw_w.shape[0]
    Kp = H * W * Cin          # unpadded spatial contraction per depth tap
    Kc = 3 * Kp               # 3 depth taps concatenated along K (lane-aligned)
    L = H * W * Cout          # lane-dense output line per (n, d)
    M = N * D                 # matmul M dimension: whole batch in one step
    m_total = float(N * D * H * W)

    # -------- host-side weight repacking / layout plumbing (one time) -------
    w_cat, b_line = _build_banded_weights(dw_w, dw_b, pw_w, pw_b, H, W,
                                          band_dtype)
    # Channel-fold (L, Cout) and channel-spread (Cout, L) selectors for BN.
    sel = jnp.asarray(np.tile(np.eye(Cout, dtype=np.float32), (H * W, 1)))
    selt = jnp.asarray(np.tile(np.eye(Cout, dtype=np.float32), (1, H * W)))
    gb = jnp.stack([gamma.astype(jnp.float32), beta.astype(jnp.float32)], 0)

    # Lane-dense activations with the 3 depth taps concatenated along K.
    x_l = jnp.transpose(x_ncdhw, (0, 2, 3, 4, 1)).reshape(N, D, Kp)
    zplane = jnp.zeros((N, 1, Kp), x_l.dtype)
    x_pad = jnp.concatenate([zplane, x_l, zplane], axis=1)     # (N, D+2, Kp)
    x_cat = jnp.concatenate(
        [x_pad[:, 0:D], x_pad[:, 1:1 + D], x_pad[:, 2:2 + D]],
        axis=-1).reshape(M, Kc).astype(jnp.float32)            # (M, Kc)

    # ------------------- fully fused single-step kernel ---------------------
    def fused_kernel(x_ref, w_ref, b_ref, sel_ref, selt_ref, gb_ref, o_ref):
        # Depthwise + pointwise conv = ONE MXU matmul: (M, Kc) @ (Kc, L).
        xm = x_ref[...].astype(w_ref.dtype)
        y = jnp.dot(xm, w_ref[...], preferred_element_type=jnp.float32)
        y = y + b_ref[...]                                     # (M, L)

        # BatchNorm batch statistics: fold the H*W channel groups with ONE
        # stacked [sum; sum-of-squares] selector matmul (2, L) @ (L, Cout).
        col = jnp.concatenate(
            [jnp.sum(y, axis=0, keepdims=True),
             jnp.sum(y * y, axis=0, keepdims=True)], axis=0)   # (2, L)
        stats = jnp.dot(col, sel_ref[...],
                        preferred_element_type=jnp.float32)    # (2, Cout)
        inv_m = 1.0 / m_total
        mean = stats[0:1, :] * inv_m
        # NOTE: E[y^2]-E[y]^2 in f32; fine at these sizes, use a centered
        # second pass for much larger N*D*H*W.
        var = jnp.maximum(stats[1:2, :] * inv_m - mean * mean, 0.0)
        scale = gb_ref[0:1, :] * lax.rsqrt(var + eps)
        shift = gb_ref[1:2, :] - mean * scale
        # Broadcast per-channel scale/shift back to the lane-dense layout with
        # ONE (2, Cout) @ (Cout, L) matmul, then BN-apply + ReLU in-register.
        ss = jnp.dot(jnp.concatenate([scale, shift], axis=0), selt_ref[...],
                     preferred_element_type=jnp.float32)       # (2, L)
        o_ref[...] = jnp.maximum(y * ss[0:1, :] + ss[1:2, :], 0.0)

    # Everything (band 1.5 MiB f32 / 0.75 MiB bf16, x_cat 48 KiB, out 32 KiB)
    # fits comfortably in VMEM, so a single invocation with whole-array VMEM
    # blocks is both the simplest and the fastest structure at these shapes.
    y_lane = pl.pallas_call(
        fused_kernel,
        out_shape=jax.ShapeDtypeStruct((M, L), jnp.float32),
        in_specs=[pl.BlockSpec(memory_space=pltpu.MemorySpace.VMEM)
                  for _ in range(6)],
        out_specs=pl.BlockSpec(memory_space=pltpu.MemorySpace.VMEM),
    )(x_cat, w_cat, b_line, sel, selt, gb)

    # --------------- back to the PyTorch NCDHW layout (XLA) -----------------
    # TODO(synk): running_mean / running_var EMA buffers of nn.BatchNorm3d are
    # not updated here (they do not affect the training-mode forward output).
    out = y_lane.reshape(N, D, H, W, Cout)
    return jnp.transpose(out, (0, 4, 1, 2, 3))


def ref_forward_ncdhw(x, dw_w_t, dw_b, pw_w_t, pw_b, gamma, beta):
    """Pure-JAX reference matching PyTorch semantics (NCDHW)."""
    Cin = x.shape[1]
    Cout = pw_w_t.shape[0]
    y = lax.conv_general_dilated(
        x, dw_w_t, window_strides=(1, 1, 1),
        padding=((1, 1), (1, 1), (1, 1)),
        dimension_numbers=("NCDHW", "OIDHW", "NCDHW"),
        feature_group_count=Cin)
    y = y + dw_b.reshape(1, Cin, 1, 1, 1)
    y = lax.conv_general_dilated(
        y, pw_w_t, window_strides=(1, 1, 1), padding="VALID",
        dimension_numbers=("NCDHW", "OIDHW", "NCDHW"))
    y = y + pw_b.reshape(1, Cout, 1, 1, 1)
    mean = jnp.mean(y, axis=(0, 2, 3, 4), keepdims=True)
    var = jnp.mean(jnp.square(y - mean), axis=(0, 2, 3, 4), keepdims=True)
    y = (y - mean) / jnp.sqrt(var + BN_EPS)
    y = y * gamma.reshape(1, Cout, 1, 1, 1) + beta.reshape(1, Cout, 1, 1, 1)
    return jnp.maximum(y, 0.0)


if __name__ == "__main__":
    # Small shapes consistent with the module: batch=2, Cin=4, Cout=8, D=H=W=8.
    N, Cin, Cout, D, H, W = 2, 4, 8, 8, 8, 8

    key = jax.random.PRNGKey(0)
    kx, kdw, kdb, kpw, kpb, kg, kb = jax.random.split(key, 7)

    x_ncdhw = jax.random.normal(kx, (N, Cin, D, H, W), jnp.float32)
    dw_w = 0.2 * jax.random.normal(kdw, (Cin, 1, 3, 3, 3), jnp.float32)
    dw_b = 0.1 * jax.random.normal(kdb, (Cin,), jnp.float32)
    pw_w = 0.2 * jax.random.normal(kpw, (Cout, Cin, 1, 1, 1), jnp.float32)
    pw_b = 0.1 * jax.random.normal(kpb, (Cout,), jnp.float32)
    gamma = 1.0 + 0.1 * jax.random.normal(kg, (Cout,), jnp.float32)
    beta = 0.1 * jax.random.normal(kb, (Cout,), jnp.float32)

    ref = ref_forward_ncdhw(x_ncdhw, dw_w, dw_b, pw_w, pw_b, gamma, beta)

    # Exact path: f32 band.
    out = dwsep_block_forward(x_ncdhw, dw_w, dw_b, pw_w, pw_b, gamma, beta,
                              band_dtype=jnp.float32)
    out = jax.block_until_ready(out)
    assert out.shape == (N, Cout, D, H, W)
    err_f32 = float(jnp.max(jnp.abs(out - ref)))
    assert jnp.allclose(out, ref, rtol=1e-3, atol=1e-3), err_f32

    # v6e/v7x perf path: bf16 band + bf16 activation cast (halves weight DMA).
    out_bf = dwsep_block_forward(x_ncdhw, dw_w, dw_b, pw_w, pw_b, gamma, beta,
                                 band_dtype=jnp.bfloat16)
    out_bf = jax.block_until_ready(out_bf)
    err_bf16 = float(jnp.max(jnp.abs(out_bf - ref)))
    assert jnp.allclose(out_bf, ref, rtol=3e-2, atol=3e-2), err_bf16

    print("KERNEL_OK")
</pallas_src>

<mosaic_0001>
module attributes {stable_mosaic.version = 11 : i64} {
  func.func @fused_kernel(%arg0: memref<16x768xf32, #tpu.memory_space<vmem>>, %arg1: memref<768x512xf32, #tpu.memory_space<vmem>>, %arg2: memref<1x512xf32, #tpu.memory_space<vmem>>, %arg3: memref<512x8xf32, #tpu.memory_space<vmem>>, %arg4: memref<8x512xf32, #tpu.memory_space<vmem>>, %arg5: memref<2x8xf32, #tpu.memory_space<vmem>>, %arg6: memref<16x512xf32, #tpu.memory_space<vmem>>) attributes {dimension_semantics = [], scalar_prefetch = 0 : i64, scratch_operands = 0 : i64, tpu.core_type = #tpu.core_type<tc>} {
    %c0 = arith.constant 0 : index
    %c0_0 = arith.constant 0 : index
    %0 = vector.load %arg0[%c0, %c0_0] : memref<16x768xf32, #tpu.memory_space<vmem>>, vector<16x768xf32>
    %c0_1 = arith.constant 0 : index
    %c0_2 = arith.constant 0 : index
    %1 = vector.load %arg1[%c0_1, %c0_2] : memref<768x512xf32, #tpu.memory_space<vmem>>, vector<768x512xf32>
    %cst = arith.constant dense<0.000000e+00> : vector<16x512xf32>
    %2 = tpu.matmul %0, %1, %cst {dimension_numbers = #tpu.dot_dimension_numbers<[1], [0], [0], [1], [0, 0, 1, 1], [], []>} : vector<16x768xf32>, vector<768x512xf32>, vector<16x512xf32> -> vector<16x512xf32>
    %c0_3 = arith.constant 0 : index
    %c0_4 = arith.constant 0 : index
    %3 = vector.load %arg2[%c0_3, %c0_4] : memref<1x512xf32, #tpu.memory_space<vmem>>, vector<1x512xf32>
    %4 = vector.broadcast %3 : vector<1x512xf32> to vector<16x512xf32>
    %5 = arith.addf %2, %4 : vector<16x512xf32>
    %cst_5 = arith.constant dense<0.000000e+00> : vector<512xf32>
    %6 = vector.multi_reduction <add>, %5, %cst_5 [0] : vector<16x512xf32> to vector<512xf32>
    %7 = vector.shape_cast %6 : vector<512xf32> to vector<1x512xf32>
    %8 = arith.mulf %5, %5 : vector<16x512xf32>
    %cst_6 = arith.constant dense<0.000000e+00> : vector<512xf32>
    %9 = vector.multi_reduction <add>, %8, %cst_6 [0] : vector<16x512xf32> to vector<512xf32>
    %10 = vector.shape_cast %9 : vector<512xf32> to vector<1x512xf32>
    %11 = tpu.concatenate %7, %10 in 0 : vector<1x512xf32>, vector<1x512xf32> -> vector<2x512xf32>
    %c0_7 = arith.constant 0 : index
    %c0_8 = arith.constant 0 : index
    %12 = vector.load %arg3[%c0_7, %c0_8] : memref<512x8xf32, #tpu.memory_space<vmem>>, vector<512x8xf32>
    %cst_9 = arith.constant dense<0.000000e+00> : vector<2x8xf32>
    %13 = tpu.matmul %11, %12, %cst_9 {dimension_numbers = #tpu.dot_dimension_numbers<[1], [0], [0], [1], [0, 0, 1, 1], [], []>} : vector<2x512xf32>, vector<512x8xf32>, vector<2x8xf32> -> vector<2x8xf32>
    %14 = vector.extract_strided_slice %13 {offsets = [0, 0], sizes = [1, 8], strides = [1, 1]} : vector<2x8xf32> to vector<1x8xf32>
    %cst_10 = arith.constant 9.765625E-4 : f32
    %15 = vector.broadcast %cst_10 : f32 to vector<1x8xf32>
    %16 = arith.mulf %14, %15 : vector<1x8xf32>
    %17 = vector.extract_strided_slice %13 {offsets = [1, 0], sizes = [1, 8], strides = [1, 1]} : vector<2x8xf32> to vector<1x8xf32>
    %cst_11 = arith.constant 9.765625E-4 : f32
    %18 = vector.broadcast %cst_11 : f32 to vector<1x8xf32>
    %19 = arith.mulf %17, %18 : vector<1x8xf32>
    %20 = arith.mulf %16, %16 : vector<1x8xf32>
    %21 = arith.subf %19, %20 : vector<1x8xf32>
    %cst_12 = arith.constant 0.000000e+00 : f32
    %22 = vector.broadcast %cst_12 : f32 to vector<1x8xf32>
    %23 = arith.maximumf %21, %22 : vector<1x8xf32>
    %c0_13 = arith.constant 0 : index
    %c0_14 = arith.constant 0 : index
    %24 = vector.load %arg5[%c0_13, %c0_14] : memref<2x8xf32, #tpu.memory_space<vmem>>, vector<1x8xf32>
    %cst_15 = arith.constant 9.99999974E-6 : f32
    %25 = vector.broadcast %cst_15 : f32 to vector<1x8xf32>
    %26 = arith.addf %23, %25 : vector<1x8xf32>
    %27 = math.rsqrt %26 : vector<1x8xf32>
    %28 = arith.mulf %24, %27 : vector<1x8xf32>
    %c1 = arith.constant 1 : index
    %c0_16 = arith.constant 0 : index
    %29 = vector.load %arg5[%c1, %c0_16] : memref<2x8xf32, #tpu.memory_space<vmem>>, vector<1x8xf32>
    %30 = arith.mulf %16, %28 : vector<1x8xf32>
    %31 = arith.subf %29, %30 : vector<1x8xf32>
    %32 = tpu.concatenate %28, %31 in 0 : vector<1x8xf32>, vector<1x8xf32> -> vector<2x8xf32>
    %c0_17 = arith.constant 0 : index
    %c0_18 = arith.constant 0 : index
    %33 = vector.load %arg4[%c0_17, %c0_18] : memref<8x512xf32, #tpu.memory_space<vmem>>, vector<8x512xf32>
    %cst_19 = arith.constant dense<0.000000e+00> : vector<2x512xf32>
    %34 = tpu.matmul %32, %33, %cst_19 {dimension_numbers = #tpu.dot_dimension_numbers<[1], [0], [0], [1], [0, 0, 1, 1], [], []>} : vector<2x8xf32>, vector<8x512xf32>, vector<2x512xf32> -> vector<2x512xf32>
    %35 = vector.extract_strided_slice %34 {offsets = [0, 0], sizes = [1, 512], strides = [1, 1]} : vector<2x512xf32> to vector<1x512xf32>
    %36 = vector.broadcast %35 : vector<1x512xf32> to vector<16x512xf32>
    %37 = arith.mulf %5, %36 : vector<16x512xf32>
    %38 = vector.extract_strided_slice %34 {offsets = [1, 0], sizes = [1, 512], strides = [1, 1]} : vector<2x512xf32> to vector<1x512xf32>
    %39 = vector.broadcast %38 : vector<1x512xf32> to vector<16x512xf32>
    %40 = arith.addf %37, %39 : vector<16x512xf32>
    %cst_20 = arith.constant 0.000000e+00 : f32
    %41 = vector.broadcast %cst_20 : f32 to vector<16x512xf32>
    %42 = arith.maximumf %40, %41 : vector<16x512xf32>
    %c0_21 = arith.constant 0 : index
    %c0_22 = arith.constant 0 : index
    %43 = vector.load %arg6[%c0_21, %c0_22] : memref<16x512xf32, #tpu.memory_space<vmem>>, vector<16x512xf32>
    tpu.vector_store %arg6[%c0_21, %c0_22], %42 {strides = array<i32>} : memref<16x512xf32, #tpu.memory_space<vmem>>, vector<16x512xf32>,
    return
  }
}

</mosaic_0001>

<bundles_post_ra>
// kernel: tpu_custom_call.1
= control target key start
LH: loop header
LB: loop body
LE: loop exit
PB: predicated region body
PF: predicated region fallthrough
CT: control target
= control target key end

     0   :  { %11 = vsyncpa [#allocation3], 0  ;;  %s2089_s0 = inlined_call_operand.hbm [shape: f32[16,768], index: 0, kind: input, shape index: {}]   ;;  %s2090_s1 = inlined_call_operand.hbm [shape: f32[768,512], index: 1, kind: input, shape index: {}]   ;;  %s2091_s2 = inlined_call_operand.hbm [shape: f32[1,512], index: 2, kind: input, shape index: {}]   ;;  %s2092_s3 = inlined_call_operand.vmem [shape: f32[512,8], index: 3, kind: input, shape index: {}]   ;;  %s2093_s4 = inlined_call_operand.hbm [shape: f32[8,512], index: 4, kind: input, shape index: {}]   ;;  %s2094_s5 = inlined_call_operand.hbm [shape: f32[2,8], index: 5, kind: input, shape index: {}]   ;;  %s2095_s6 = inlined_call_operand.hbm [shape: f32[16,512], index: 6, kind: output, shape index: {}]  }
   0x1   :  { %12 = vsyncpa [#allocation6], 0 }
   0x2   :  { %13 = vsyncpa [#allocation9], 0 }
   0x3   :  { %14 = vsyncpa [#allocation4], 0  ;;  %s1708_s21 = smov [#allocation5]  }
   0x4   :  { %s32_s22 = sshll.u32 %s1708_s21, 4  ;;  %s33_s22 = int_to_ptr.vmem [resolvable:$true] %s32_s22 }
   0x5   :  { %s1588_s23 = scalar_lea.vmem %s33_s22, 49152  ;;  %p1593_p1 = scmp.lt.s32.totalorder %s33_s22, %s33_s22 }
   0x6   :  { %p1589_p0 = scmp.ne.s32.totalorder %s33_s22, %s1588_s23  ;;  %p1594_p2 = scmp.lt.s32.totalorder %s1588_s23, %s1588_s23 }
   0x8   :  { %p1595_p3 = por %p1594_p2, %p1593_p1 }
   0xa   :  { %p1596_p4 = pnand %p1595_p3, %p1589_p0 }
   0xc   :  { %1599 = shalt.err (!%p1596_p4)
}
   0xd   :  { %s1709_s24 = smov 512   ;;  %s1710_s25 = smov 32  }
   0xe   :  { %38 = dma.hbm_to_vmem [thread:$0]  %s2090_s1, 49152, %s33_s22, [#allocation6], %s1709_s24, %s1709_s24, %s1710_s25  }
   0xf   :  { %s1711_s28 = smov [#allocation8]   ;;  %s1712_s30 = smov [#allocation2]  }
  0x10   :  { %s57_s29 = sshll.u32 %s1711_s28, 4  ;;  %s20_s7 = sshll.u32 %s1712_s30, 4  ;;  %s58_s29 = int_to_ptr.vmem [resolvable:$true] %s57_s29  ;;  %s21_s7 = int_to_ptr.vmem [resolvable:$true] %s20_s7 }
  0x11   :  { %s1608_s8 = scalar_lea.vmem %s58_s29, 512  ;;  %p1613_p6 = scmp.lt.s32.totalorder %s58_s29, %s58_s29 }
  0x12   :  { %p1609_p5 = scmp.ne.s32.totalorder %s58_s29, %s1608_s8  ;;  %p1614_p7 = scmp.lt.s32.totalorder %s1608_s8, %s1608_s8 }
  0x14   :  { %p1615_p8 = por %p1614_p7, %p1613_p6 }
  0x16   :  { %p1616_p9 = pnand %p1615_p8, %p1609_p5 }
  0x18   :  { %1619 = shalt.err (!%p1616_p9)
}
  0x19   :  { %60 = dma.hbm_to_vmem [thread:$0]  %s2093_s4, 512, %s58_s29, [#allocation9]  }
  0x1a   :  { %s1628_s11 = scalar_lea.vmem %s21_s7, 1536  ;;  %p1633_p11 = scmp.lt.s32.totalorder %s21_s7, %s21_s7 }
  0x1b   :  { %p1629_p10 = scmp.ne.s32.totalorder %s21_s7, %s1628_s11  ;;  %p1634_p12 = scmp.lt.s32.totalorder %s1628_s11, %s1628_s11 }
  0x1d   :  { %p1635_p13 = por %p1634_p12, %p1633_p11 }
  0x1f   :  { %p1636_p0 = pnand %p1635_p13, %p1629_p10 }
  0x21   :  { %1639 = shalt.err (!%p1636_p0)
}
  0x22   :  { %s1713_s1 = smov 768   ;;  %s1714_s12 = smov 48  }
  0x23   :  { %26 = dma.hbm_to_vmem [thread:$0]  %s2089_s0, 1536, %s21_s7, [#allocation3], %s1713_s1, %s1713_s1, %s1714_s12  }
  0x24   :  { %s1715_s15 = smov [#allocation7]   ;;  %s1716_s17 = smov [#allocation10]  }
  0x25   :  { %s45_s16 = sshll.u32 %s1715_s15, 4  ;;  %s67_s18 = sshll.u32 %s1716_s17, 4  ;;  %s46_s16 = int_to_ptr.vmem [resolvable:$true] %s45_s16  ;;  %s68_s18 = int_to_ptr.vmem [resolvable:$true] %s67_s18 }
  0x26   :  { %s1648_s4 = scalar_lea.vmem %s46_s16, 64  ;;  %p1653_p2 = scmp.lt.s32.totalorder %s46_s16, %s46_s16 }
  0x27   :  { %p1649_p1 = scmp.ne.s32.totalorder %s46_s16, %s1648_s4  ;;  %p1654_p3 = scmp.lt.s32.totalorder %s1648_s4, %s1648_s4 }
  0x29   :  { %p1655_p4 = por %p1654_p3, %p1653_p2 }
  0x2b   :  { %p1656_p5 = pnand %p1655_p4, %p1649_p1 }
  0x2d   :  { %1659 = shalt.err (!%p1656_p5)
}
  0x2e   :  { %48 = dma.hbm_to_vmem [thread:$0]  %s2091_s2, 64, %s46_s16, [#allocation6]  }
  0x2f   :  { %s1668_s21 = scalar_lea.vmem %s68_s18, 32  ;;  %p1673_p7 = scmp.lt.s32.totalorder %s68_s18, %s68_s18 }
  0x30   :  { %p1669_p6 = scmp.ne.s32.totalorder %s68_s18, %s1668_s21  ;;  %p1674_p8 = scmp.lt.s32.totalorder %s1668_s21, %s1668_s21 }
  0x32   :  { %p1675_p9 = por %p1674_p8, %p1673_p7 }
  0x34   :  { %p1676_p10 = pnand %p1675_p9, %p1669_p6 }
  0x36   :  { %1679 = shalt.err (!%p1676_p10)
}
  0x37   :  { %70 = dma.hbm_to_vmem [thread:$0]  %s2094_s5, 32, %s68_s18, [#allocation9]  }
  0x38   :  { %1700 = dma.done.wait [#allocation3], 1536  }
  0x39   :  { %1701 = vsyncadd [#allocation3], 4294965760 }
  0x3a   :  { %1702 = dma.done.wait [#allocation6], 49216  }
  0x3b   :  { %1703 = vsyncadd [#allocation6], 4294918080 }
  0x3c   :  { %1704 = dma.done.wait [#allocation9], 544  }
  0x3d   :  { %1705 = vsyncadd [#allocation9], 4294966752  ;;  %v159_v0 = vld [vmem:[#allocation5 + $0x1e8] sm:$0xff]  ;;  %v158_v2 = vld [vmem:[#allocation5 + $0x1e0] sm:$0xff]  ;;  %vm1030_vm0 = vcmask 1040384   ;;  %vm1264_vm1 = vcmask 64512  }
  0x3e   :  { %v287_v1 = vld [vmem:[#allocation5 + $0x5e8] sm:$0xff]  ;;  %504 = vmatprep.subr.mxu0 %v159_v0  ;;  %v286_v3 = vld [vmem:[#allocation5 + $0x5e0] sm:$0xff] }
  0x3f   :  { %581 = vmatprep.subr.mxu1 %v287_v1  ;;  %v155_v4 = vld [vmem:[#allocation5 + $0x1c8] sm:$0xff]  ;;  %505 = vmatpush1.msra.mxu0 %v158_v2  ;;  %v154_v6 = vld [vmem:[#allocation5 + $0x1c0] sm:$0xff] }
  0x40   :  { %v283_v5 = vld [vmem:[#allocation5 + $0x5c8] sm:$0xff]  ;;  %582 = vmatpush1.msra.mxu1 %v286_v3  ;;  %v282_v7 = vld [vmem:[#allocation5 + $0x5c0] sm:$0xff]  ;;  %506 = vmatprep.subr.mxu0 %v155_v4 }
  0x41   :  { %v151_v8 = vld [vmem:[#allocation5 + $0x1a8] sm:$0xff]  ;;  %583 = vmatprep.subr.mxu1 %v283_v5  ;;  %v150_v10 = vld [vmem:[#allocation5 + $0x1a0] sm:$0xff]  ;;  %507 = vmatpush1.msra.mxu0 %v154_v6 }
  0x42   :  { %v279_v9 = vld [vmem:[#allocation5 + $0x5a8] sm:$0xff]  ;;  %v278_v11 = vld [vmem:[#allocation5 + $0x5a0] sm:$0xff]  ;;  %584 = vmatpush1.msra.mxu1 %v282_v7  ;;  %508 = vmatprep.subr.mxu0 %v151_v8 }
  0x43   :  { %v147_v12 = vld [vmem:[#allocation5 + $0x188] sm:$0xff]  ;;  %585 = vmatprep.subr.mxu1 %v279_v9  ;;  %v146_v14 = vld [vmem:[#allocation5 + $0x180] sm:$0xff]  ;;  %509 = vmatpush1.msra.mxu0 %v150_v10 }
  0x44   :  { %v275_v13 = vld [vmem:[#allocation5 + $0x588] sm:$0xff]  ;;  %v274_v15 = vld [vmem:[#allocation5 + $0x580] sm:$0xff]  ;;  %586 = vmatpush1.msra.mxu1 %v278_v11  ;;  %510 = vmatprep.subr.mxu0 %v147_v12 }
  0x45   :  { %v143_v16 = vld [vmem:[#allocation5 + $0x168] sm:$0xff]  ;;  %587 = vmatprep.subr.mxu1 %v275_v13  ;;  %v142_v18 = vld [vmem:[#allocation5 + $0x160] sm:$0xff]  ;;  %511 = vmatpush1.msra.mxu0 %v146_v14 }
  0x46   :  { %v271_v17 = vld [vmem:[#allocation5 + $0x568] sm:$0xff]  ;;  %v270_v19 = vld [vmem:[#allocation5 + $0x560] sm:$0xff]  ;;  %588 = vmatpush1.msra.mxu1 %v274_v15  ;;  %512 = vmatprep.subr.mxu0 %v143_v16 }
  0x47   :  { %v139_v20 = vld [vmem:[#allocation5 + $0x148] sm:$0xff]  ;;  %589 = vmatprep.subr.mxu1 %v271_v17  ;;  %v138_v22 = vld [vmem:[#allocation5 + $0x140] sm:$0xff]  ;;  %513 = vmatpush1.msra.mxu0 %v142_v18 }
  0x48   :  { %v267_v21 = vld [vmem:[#allocation5 + $0x548] sm:$0xff]  ;;  %v266_v23 = vld [vmem:[#allocation5 + $0x540] sm:$0xff]  ;;  %590 = vmatpush1.msra.mxu1 %v270_v19  ;;  %514 = vmatprep.subr.mxu0 %v139_v20 }
  0x49   :  { %v135_v24 = vld [vmem:[#allocation5 + $0x128] sm:$0xff]  ;;  %591 = vmatprep.subr.mxu1 %v267_v21  ;;  %v134_v26 = vld [vmem:[#allocation5 + $0x120] sm:$0xff]  ;;  %515 = vmatpush1.msra.mxu0 %v138_v22 }
  0x4a   :  { %v263_v25 = vld [vmem:[#allocation5 + $0x528] sm:$0xff]  ;;  %v262_v27 = vld [vmem:[#allocation5 + $0x520] sm:$0xff]  ;;  %592 = vmatpush1.msra.mxu1 %v266_v23  ;;  %516 = vmatprep.subr.mxu0 %v135_v24 }
  0x4b   :  { %v131_v28 = vld [vmem:[#allocation5 + $0x108] sm:$0xff]  ;;  %593 = vmatprep.subr.mxu1 %v263_v25  ;;  %v130_v30 = vld [vmem:[#allocation5 + $0x100] sm:$0xff]  ;;  %517 = vmatpush1.msra.mxu0 %v134_v26 }
  0x4c   :  { %v259_v29 = vld [vmem:[#allocation5 + $0x508] sm:$0xff]  ;;  %v258_v31 = vld [vmem:[#allocation5 + $0x500] sm:$0xff]  ;;  %594 = vmatpush1.msra.mxu1 %v262_v27  ;;  %518 = vmatprep.subr.mxu0 %v131_v28 }
  0x4d   :  { %v127_v32 = vld [vmem:[#allocation5 + $0xe8] sm:$0xff]  ;;  %595 = vmatprep.subr.mxu1 %v259_v29  ;;  %v126_v34 = vld [vmem:[#allocation5 + $0xe0] sm:$0xff]  ;;  %519 = vmatpush1.msra.mxu0 %v130_v30 }
  0x4e   :  { %v255_v33 = vld [vmem:[#allocation5 + $0x4e8] sm:$0xff]  ;;  %v254_v35 = vld [vmem:[#allocation5 + $0x4e0] sm:$0xff]  ;;  %596 = vmatpush1.msra.mxu1 %v258_v31  ;;  %520 = vmatprep.subr.mxu0 %v127_v32 }
  0x4f   :  { %v123_v36 = vld [vmem:[#allocation5 + $0xc8] sm:$0xff]  ;;  %597 = vmatprep.subr.mxu1 %v255_v33  ;;  %v122_v38 = vld [vmem:[#allocation5 + $0xc0] sm:$0xff]  ;;  %521 = vmatpush1.msra.mxu0 %v126_v34 }
  0x50   :  { %v251_v37 = vld [vmem:[#allocation5 + $0x4c8] sm:$0xff]  ;;  %v250_v39 = vld [vmem:[#allocation5 + $0x4c0] sm:$0xff]  ;;  %598 = vmatpush1.msra.mxu1 %v254_v35  ;;  %522 = vmatprep.subr.mxu0 %v123_v36 }
  0x51   :  { %v119_v40 = vld [vmem:[#allocation5 + $0xa8] sm:$0xff]  ;;  %599 = vmatprep.subr.mxu1 %v251_v37  ;;  %v118_v42 = vld [vmem:[#allocation5 + $0xa0] sm:$0xff]  ;;  %523 = vmatpush1.msra.mxu0 %v122_v38 }
  0x52   :  { %v247_v41 = vld [vmem:[#allocation5 + $0x4a8] sm:$0xff]  ;;  %v246_v43 = vld [vmem:[#allocation5 + $0x4a0] sm:$0xff]  ;;  %600 = vmatpush1.msra.mxu1 %v250_v39  ;;  %524 = vmatprep.subr.mxu0 %v119_v40 }
  0x53   :  { %v115_v44 = vld [vmem:[#allocation5 + $0x88] sm:$0xff]  ;;  %601 = vmatprep.subr.mxu1 %v247_v41  ;;  %v114_v46 = vld [vmem:[#allocation5 + $0x80] sm:$0xff]  ;;  %525 = vmatpush1.msra.mxu0 %v118_v42 }
  0x54   :  { %v243_v45 = vld [vmem:[#allocation5 + $0x488] sm:$0xff]  ;;  %v242_v47 = vld [vmem:[#allocation5 + $0x480] sm:$0xff]  ;;  %602 = vmatpush1.msra.mxu1 %v246_v43  ;;  %526 = vmatprep.subr.mxu0 %v115_v44 }
  0x55   :  { %v111_v48 = vld [vmem:[#allocation5 + $0x68] sm:$0xff]  ;;  %603 = vmatprep.subr.mxu1 %v243_v45  ;;  %v110_v50 = vld [vmem:[#allocation5 + $0x60] sm:$0xff]  ;;  %527 = vmatpush1.msra.mxu0 %v114_v46 }
  0x56   :  { %v239_v49 = vld [vmem:[#allocation5 + $0x468] sm:$0xff]  ;;  %v238_v51 = vld [vmem:[#allocation5 + $0x460] sm:$0xff]  ;;  %604 = vmatpush1.msra.mxu1 %v242_v47  ;;  %528 = vmatprep.subr.mxu0 %v111_v48 }
  0x57   :  { %v107_v52 = vld [vmem:[#allocation5 + $0x48] sm:$0xff]  ;;  %605 = vmatprep.subr.mxu1 %v239_v49  ;;  %v106_v54 = vld [vmem:[#allocation5 + $0x40] sm:$0xff]  ;;  %529 = vmatpush1.msra.mxu0 %v110_v50 }
  0x58   :  { %v235_v53 = vld [vmem:[#allocation5 + $0x448] sm:$0xff]  ;;  %v234_v55 = vld [vmem:[#allocation5 + $0x440] sm:$0xff]  ;;  %606 = vmatpush1.msra.mxu1 %v238_v51  ;;  %530 = vmatprep.subr.mxu0 %v107_v52 }
  0x59   :  { %v103_v56 = vld [vmem:[#allocation5 + $0x28] sm:$0xff]  ;;  %607 = vmatprep.subr.mxu1 %v235_v53  ;;  %v102_v58 = vld [vmem:[#allocation5 + $0x20] sm:$0xff]  ;;  %531 = vmatpush1.msra.mxu0 %v106_v54 }
  0x5a   :  { %v231_v57 = vld [vmem:[#allocation5 + $0x428] sm:$0xff]  ;;  %v230_v59 = vld [vmem:[#allocation5 + $0x420] sm:$0xff]  ;;  %608 = vmatpush1.msra.mxu1 %v234_v55  ;;  %532 = vmatprep.subr.mxu0 %v103_v56 }
  0x5b   :  { %v99_v60 = vld [vmem:[#allocation5 + $0x8] sm:$0xff]  ;;  %609 = vmatprep.subr.mxu1 %v231_v57  ;;  %v98_v62 = vld [vmem:[#allocation5] sm:$0xff]  ;;  %533 = vmatpush1.msra.mxu0 %v102_v58 }
  0x5c   :  { %v227_v61 = vld [vmem:[#allocation5 + $0x408] sm:$0xff]  ;;  %v226_v63 = vld [vmem:[#allocation5 + $0x400] sm:$0xff]  ;;  %610 = vmatpush1.msra.mxu1 %v230_v59  ;;  %534 = vmatprep.subr.mxu0 %v99_v60 }
  0x5d   :  { %v223_v0 = vld [vmem:[#allocation5 + $0x3e8] sm:$0xff]  ;;  %611 = vmatprep.subr.mxu1 %v227_v61  ;;  %v222_v2 = vld [vmem:[#allocation5 + $0x3e0] sm:$0xff]  ;;  %535 = vmatpush1.msra.mxu0 %v98_v62 }
  0x5e   :  { %v351_v1 = vld [vmem:[#allocation5 + $0x7e8] sm:$0xff]  ;;  %v350_v3 = vld [vmem:[#allocation5 + $0x7e0] sm:$0xff]  ;;  %612 = vmatpush1.msra.mxu1 %v226_v63  ;;  %536 = vmatprep.subr.mxu0 %v223_v0 }
  0x5f   :  { %v219_v4 = vld [vmem:[#allocation5 + $0x3c8] sm:$0xff]  ;;  %613 = vmatprep.subr.mxu1 %v351_v1  ;;  %v218_v6 = vld [vmem:[#allocation5 + $0x3c0] sm:$0xff]  ;;  %537 = vmatpush2.msra.mxu0 %v222_v2  ;;  %v89_v2 = vld [vmem:[#allocation2 + $0x18] sm:$0xff] }
  0x60   :  { %v347_v5 = vld [vmem:[#allocation5 + $0x7c8] sm:$0xff]  ;;  %v346_v7 = vld [vmem:[#allocation5 + $0x7c0] sm:$0xff]  ;;  %614 = vmatpush2.msra.mxu1 %v350_v3  ;;  %538 = vmatprep.subr.mxu0 %v219_v4  ;;  %v161_v4 = vld [vmem:[#allocation5 + $0x1f8] sm:$0xff] }
  0x61   :  { %v215_v8 = vld [vmem:[#allocation5 + $0x3a8] sm:$0xff]  ;;  %615 = vmatprep.subr.mxu1 %v347_v5  ;;  %v214_v10 = vld [vmem:[#allocation5 + $0x3a0] sm:$0xff]  ;;  %539 = vmatpush2.msra.mxu0 %v218_v6  ;;  %v88_v5 = vld [vmem:[#allocation2 + $0x10] sm:$0xff] }
  0x62   :  { %v343_v9 = vld [vmem:[#allocation5 + $0x7a8] sm:$0xff]  ;;  %v342_v11 = vld [vmem:[#allocation5 + $0x7a0] sm:$0xff]  ;;  %616 = vmatpush2.msra.mxu1 %v346_v7  ;;  %540 = vmatprep.subr.mxu0 %v215_v8  ;;  %v160_v7 = vld [vmem:[#allocation5 + $0x1f0] sm:$0xff] }
  0x63   :  { %v211_v12 = vld [vmem:[#allocation5 + $0x388] sm:$0xff]  ;;  %617 = vmatprep.subr.mxu1 %v343_v9  ;;  %v210_v14 = vld [vmem:[#allocation5 + $0x380] sm:$0xff]  ;;  %541 = vmatpush2.msra.mxu0 %v214_v10  ;;  %v157_v9 = vld [vmem:[#allocation5 + $0x1d8] sm:$0xff] }
  0x64   :  { %v339_v13 = vld [vmem:[#allocation5 + $0x788] sm:$0xff]  ;;  %v338_v15 = vld [vmem:[#allocation5 + $0x780] sm:$0xff]  ;;  %618 = vmatpush2.msra.mxu1 %v342_v11  ;;  %542 = vmatprep.subr.mxu0 %v211_v12  ;;  %v156_v11 = vld [vmem:[#allocation5 + $0x1d0] sm:$0xff] }
  0x65   :  { %v207_v16 = vld [vmem:[#allocation5 + $0x368] sm:$0xff]  ;;  %619 = vmatprep.subr.mxu1 %v339_v13  ;;  %v206_v18 = vld [vmem:[#allocation5 + $0x360] sm:$0xff]  ;;  %543 = vmatpush2.msra.mxu0 %v210_v14  ;;  %v153_v13 = vld [vmem:[#allocation5 + $0x1b8] sm:$0xff] }
  0x66   :  { %v335_v17 = vld [vmem:[#allocation5 + $0x768] sm:$0xff]  ;;  %v334_v19 = vld [vmem:[#allocation5 + $0x760] sm:$0xff]  ;;  %620 = vmatpush2.msra.mxu1 %v338_v15  ;;  %544 = vmatprep.subr.mxu0 %v207_v16  ;;  %v152_v15 = vld [vmem:[#allocation5 + $0x1b0] sm:$0xff] }
  0x67   :  { %v203_v20 = vld [vmem:[#allocation5 + $0x348] sm:$0xff]  ;;  %621 = vmatprep.subr.mxu1 %v335_v17  ;;  %v202_v22 = vld [vmem:[#allocation5 + $0x340] sm:$0xff]  ;;  %545 = vmatpush2.msra.mxu0 %v206_v18  ;;  %v149_v17 = vld [vmem:[#allocation5 + $0x198] sm:$0xff] }
  0x68   :  { %v331_v21 = vld [vmem:[#allocation5 + $0x748] sm:$0xff]  ;;  %v330_v23 = vld [vmem:[#allocation5 + $0x740] sm:$0xff]  ;;  %622 = vmatpush2.msra.mxu1 %v334_v19  ;;  %546 = vmatprep.subr.mxu0 %v203_v20  ;;  %v148_v19 = vld [vmem:[#allocation5 + $0x190] sm:$0xff] }
  0x69   :  { %v199_v24 = vld [vmem:[#allocation5 + $0x328] sm:$0xff]  ;;  %623 = vmatprep.subr.mxu1 %v331_v21  ;;  %v198_v26 = vld [vmem:[#allocation5 + $0x320] sm:$0xff]  ;;  %547 = vmatpush2.msra.mxu0 %v202_v22  ;;  %v145_v21 = vld [vmem:[#allocation5 + $0x178] sm:$0xff] }
  0x6a   :  { %v327_v25 = vld [vmem:[#allocation5 + $0x728] sm:$0xff]  ;;  %v326_v27 = vld [vmem:[#allocation5 + $0x720] sm:$0xff]  ;;  %624 = vmatpush2.msra.mxu1 %v330_v23  ;;  %548 = vmatprep.subr.mxu0 %v199_v24  ;;  %v144_v23 = vld [vmem:[#allocation5 + $0x170] sm:$0xff] }
  0x6b   :  { %v195_v28 = vld [vmem:[#allocation5 + $0x308] sm:$0xff]  ;;  %625 = vmatprep.subr.mxu1 %v327_v25  ;;  %v194_v30 = vld [vmem:[#allocation5 + $0x300] sm:$0xff]  ;;  %549 = vmatpush2.msra.mxu0 %v198_v26  ;;  %v141_v25 = vld [vmem:[#allocation5 + $0x158] sm:$0xff] }
  0x6c   :  { %v323_v29 = vld [vmem:[#allocation5 + $0x708] sm:$0xff]  ;;  %v322_v31 = vld [vmem:[#allocation5 + $0x700] sm:$0xff]  ;;  %626 = vmatpush2.msra.mxu1 %v326_v27  ;;  %550 = vmatprep.subr.mxu0 %v195_v28  ;;  %v140_v27 = vld [vmem:[#allocation5 + $0x150] sm:$0xff] }
  0x6d   :  { %v191_v32 = vld [vmem:[#allocation5 + $0x2e8] sm:$0xff]  ;;  %627 = vmatprep.subr.mxu1 %v323_v29  ;;  %v190_v34 = vld [vmem:[#allocation5 + $0x2e0] sm:$0xff]  ;;  %551 = vmatpush2.msra.mxu0 %v194_v30  ;;  %v137_v29 = vld [vmem:[#allocation5 + $0x138] sm:$0xff] }
  0x6e   :  { %v319_v33 = vld [vmem:[#allocation5 + $0x6e8] sm:$0xff]  ;;  %v318_v35 = vld [vmem:[#allocation5 + $0x6e0] sm:$0xff]  ;;  %628 = vmatpush2.msra.mxu1 %v322_v31  ;;  %552 = vmatprep.subr.mxu0 %v191_v32  ;;  %v136_v31 = vld [vmem:[#allocation5 + $0x130] sm:$0xff] }
  0x6f   :  { %v187_v36 = vld [vmem:[#allocation5 + $0x2c8] sm:$0xff]  ;;  %629 = vmatprep.subr.mxu1 %v319_v33  ;;  %v186_v38 = vld [vmem:[#allocation5 + $0x2c0] sm:$0xff]  ;;  %553 = vmatpush2.msra.mxu0 %v190_v34  ;;  %v133_v33 = vld [vmem:[#allocation5 + $0x118] sm:$0xff] }
  0x70   :  { %v315_v37 = vld [vmem:[#allocation5 + $0x6c8] sm:$0xff]  ;;  %v314_v39 = vld [vmem:[#allocation5 + $0x6c0] sm:$0xff]  ;;  %630 = vmatpush2.msra.mxu1 %v318_v35  ;;  %554 = vmatprep.subr.mxu0 %v187_v36  ;;  %v132_v35 = vld [vmem:[#allocation5 + $0x110] sm:$0xff] }
  0x71   :  { %v183_v40 = vld [vmem:[#allocation5 + $0x2a8] sm:$0xff]  ;;  %631 = vmatprep.subr.mxu1 %v315_v37  ;;  %v182_v42 = vld [vmem:[#allocation5 + $0x2a0] sm:$0xff]  ;;  %555 = vmatpush2.msra.mxu0 %v186_v38  ;;  %v129_v37 = vld [vmem:[#allocation5 + $0xf8] sm:$0xff] }
  0x72   :  { %v311_v41 = vld [vmem:[#allocation5 + $0x6a8] sm:$0xff]  ;;  %v310_v43 = vld [vmem:[#allocation5 + $0x6a0] sm:$0xff]  ;;  %632 = vmatpush2.msra.mxu1 %v314_v39  ;;  %556 = vmatprep.subr.mxu0 %v183_v40  ;;  %v128_v39 = vld [vmem:[#allocation5 + $0xf0] sm:$0xff] }
  0x73   :  { %v179_v44 = vld [vmem:[#allocation5 + $0x288] sm:$0xff]  ;;  %633 = vmatprep.subr.mxu1 %v311_v41  ;;  %v178_v46 = vld [vmem:[#allocation5 + $0x280] sm:$0xff]  ;;  %557 = vmatpush2.msra.mxu0 %v182_v42  ;;  %v125_v41 = vld [vmem:[#allocation5 + $0xd8] sm:$0xff] }
  0x74   :  { %v307_v45 = vld [vmem:[#allocation5 + $0x688] sm:$0xff]  ;;  %v306_v47 = vld [vmem:[#allocation5 + $0x680] sm:$0xff]  ;;  %634 = vmatpush2.msra.mxu1 %v310_v43  ;;  %558 = vmatprep.subr.mxu0 %v179_v44  ;;  %v124_v43 = vld [vmem:[#allocation5 + $0xd0] sm:$0xff] }
  0x75   :  { %v175_v48 = vld [vmem:[#allocation5 + $0x268] sm:$0xff]  ;;  %635 = vmatprep.subr.mxu1 %v307_v45  ;;  %v174_v50 = vld [vmem:[#allocation5 + $0x260] sm:$0xff]  ;;  %559 = vmatpush2.msra.mxu0 %v178_v46  ;;  %v121_v45 = vld [vmem:[#allocation5 + $0xb8] sm:$0xff] }
  0x76   :  { %v303_v49 = vld [vmem:[#allocation5 + $0x668] sm:$0xff]  ;;  %v302_v51 = vld [vmem:[#allocation5 + $0x660] sm:$0xff]  ;;  %636 = vmatpush2.msra.mxu1 %v306_v47  ;;  %560 = vmatprep.subr.mxu0 %v175_v48  ;;  %v120_v47 = vld [vmem:[#allocation5 + $0xb0] sm:$0xff] }
  0x77   :  { %v171_v52 = vld [vmem:[#allocation5 + $0x248] sm:$0xff]  ;;  %637 = vmatprep.subr.mxu1 %v303_v49  ;;  %v170_v54 = vld [vmem:[#allocation5 + $0x240] sm:$0xff]  ;;  %561 = vmatpush2.msra.mxu0 %v174_v50  ;;  %v117_v49 = vld [vmem:[#allocation5 + $0x98] sm:$0xff] }
  0x78   :  { %v299_v53 = vld [vmem:[#allocation5 + $0x648] sm:$0xff]  ;;  %v298_v55 = vld [vmem:[#allocation5 + $0x640] sm:$0xff]  ;;  %638 = vmatpush2.msra.mxu1 %v302_v51  ;;  %562 = vmatprep.subr.mxu0 %v171_v52  ;;  %v116_v51 = vld [vmem:[#allocation5 + $0x90] sm:$0xff] }
  0x79   :  { %v167_v56 = vld [vmem:[#allocation5 + $0x228] sm:$0xff]  ;;  %639 = vmatprep.subr.mxu1 %v299_v53  ;;  %v166_v58 = vld [vmem:[#allocation5 + $0x220] sm:$0xff]  ;;  %563 = vmatpush2.msra.mxu0 %v170_v54  ;;  %v113_v53 = vld [vmem:[#allocation5 + $0x78] sm:$0xff] }
  0x7a   :  { %v295_v57 = vld [vmem:[#allocation5 + $0x628] sm:$0xff]  ;;  %v294_v59 = vld [vmem:[#allocation5 + $0x620] sm:$0xff]  ;;  %640 = vmatpush2.msra.mxu1 %v298_v55  ;;  %564 = vmatprep.subr.mxu0 %v167_v56  ;;  %v112_v55 = vld [vmem:[#allocation5 + $0x70] sm:$0xff] }
  0x7b   :  { %v163_v60 = vld [vmem:[#allocation5 + $0x208] sm:$0xff]  ;;  %641 = vmatprep.subr.mxu1 %v295_v57  ;;  %v162_v62 = vld [vmem:[#allocation5 + $0x200] sm:$0xff]  ;;  %565 = vmatpush2.msra.mxu0 %v166_v58  ;;  %v109_v57 = vld [vmem:[#allocation5 + $0x58] sm:$0xff] }
  0x7c   :  { %v291_v61 = vld [vmem:[#allocation5 + $0x608] sm:$0xff]  ;;  %642 = vmatpush2.msra.mxu1 %v294_v59  ;;  %v290_v0 = vld [vmem:[#allocation5 + $0x600] sm:$0xff]  ;;  %566 = vmatprep.subr.mxu0 %v163_v60  ;;  %v108_v59 = vld [vmem:[#allocation5 + $0x50] sm:$0xff] }
  0x7d   :  { %v1772_v63 = vld [vmem:[#allocation2 + $0x8] sm:$0xff]  ;;  %v1774_v1 = vld [vmem:[#allocation2] sm:$0xff]  ;;  %643 = vmatprep.subr.mxu1 %v291_v61  ;;  %567 = vmatpush2.msra.mxu0 %v162_v62  ;;  %v105_v61 = vld [vmem:[#allocation5 + $0x38] sm:$0xff] }
  0x7e   :  { %v415_v3 = vld [vmem:[#allocation5 + $0x9e8] sm:$0xff]  ;;  %568 = vmatprep.mubr.f32.mxu0 %v1772_v63  ;;  %644 = vmatpush2.msra.mxu1 %v290_v0  ;;  %v414_v6 = vld [vmem:[#allocation5 + $0x9e0] sm:$0xff]  ;;  %v104_v0 = vld [vmem:[#allocation5 + $0x30] sm:$0xff] }
  0x7f   :  { %569 = vmatmul.mubr.f32.vlgmr.msra.gmra.mxu0 %v1774_v1  ;;  %645 = vmatprep.mubr.f32.mxu1 %v89_v2  ;;  %v411_v8 = vld [vmem:[#allocation5 + $0x9c8] sm:$0xff]  ;;  %v410_v10 = vld [vmem:[#allocation5 + $0x9c0] sm:$0xff] }
  0x80   :  { %658 = vmatprep.subr.mxu0 %v415_v3  ;;  %735 = vmatprep.subr.mxu1 %v161_v4  ;;  %v407_v12 = vld [vmem:[#allocation5 + $0x9a8] sm:$0xff]  ;;  %v406_v14 = vld [vmem:[#allocation5 + $0x9a0] sm:$0xff]  ;;  %v101_v3 = vld [vmem:[#allocation5 + $0x18] sm:$0xff] }
  0x81   :  { %646 = vmatmul.mubr.f32.vlgmr.msra.gmra.mxu1 %v88_v5  ;;  %659 = vmatpush1.msra.mxu0 %v414_v6  ;;  %v403_v16 = vld [vmem:[#allocation5 + $0x988] sm:$0xff]  ;;  %v402_v18 = vld [vmem:[#allocation5 + $0x980] sm:$0xff]  ;;  %v100_v5 = vld [vmem:[#allocation5 + $0x10] sm:$0xff] }
  0x82   :  { %736 = vmatpush1.msra.mxu1 %v160_v7  ;;  %660 = vmatprep.subr.mxu0 %v411_v8  ;;  %v399_v20 = vld [vmem:[#allocation5 + $0x968] sm:$0xff]  ;;  %v398_v22 = vld [vmem:[#allocation5 + $0x960] sm:$0xff]  ;;  %v225_v7 = vld [vmem:[#allocation5 + $0x3f8] sm:$0xff] }
  0x83   :  { %737 = vmatprep.subr.mxu1 %v157_v9  ;;  %661 = vmatpush1.msra.mxu0 %v410_v10  ;;  %v395_v24 = vld [vmem:[#allocation5 + $0x948] sm:$0xff]  ;;  %v394_v26 = vld [vmem:[#allocation5 + $0x940] sm:$0xff]  ;;  %v224_v9 = vld [vmem:[#allocation5 + $0x3f0] sm:$0xff] }
  0x84   :  { %738 = vmatpush1.msra.mxu1 %v156_v11  ;;  %662 = vmatprep.subr.mxu0 %v407_v12  ;;  %v391_v28 = vld [vmem:[#allocation5 + $0x928] sm:$0xff]  ;;  %v390_v30 = vld [vmem:[#allocation5 + $0x920] sm:$0xff]  ;;  %v221_v11 = vld [vmem:[#allocation5 + $0x3d8] sm:$0xff] }
  0x85   :  { %739 = vmatprep.subr.mxu1 %v153_v13  ;;  %663 = vmatpush1.msra.mxu0 %v406_v14  ;;  %v387_v32 = vld [vmem:[#allocation5 + $0x908] sm:$0xff]  ;;  %v386_v34 = vld [vmem:[#allocation5 + $0x900] sm:$0xff]  ;;  %v220_v13 = vld [vmem:[#allocation5 + $0x3d0] sm:$0xff] }
  0x86   :  { %740 = vmatpush1.msra.mxu1 %v152_v15  ;;  %664 = vmatprep.subr.mxu0 %v403_v16  ;;  %v383_v36 = vld [vmem:[#allocation5 + $0x8e8] sm:$0xff]  ;;  %v382_v38 = vld [vmem:[#allocation5 + $0x8e0] sm:$0xff]  ;;  %v217_v15 = vld [vmem:[#allocation5 + $0x3b8] sm:$0xff] }
  0x87   :  { %741 = vmatprep.subr.mxu1 %v149_v17  ;;  %665 = vmatpush1.msra.mxu0 %v402_v18  ;;  %v379_v40 = vld [vmem:[#allocation5 + $0x8c8] sm:$0xff]  ;;  %v378_v42 = vld [vmem:[#allocation5 + $0x8c0] sm:$0xff]  ;;  %v216_v17 = vld [vmem:[#allocation5 + $0x3b0] sm:$0xff] }
  0x88   :  { %742 = vmatpush1.msra.mxu1 %v148_v19  ;;  %666 = vmatprep.subr.mxu0 %v399_v20  ;;  %v375_v44 = vld [vmem:[#allocation5 + $0x8a8] sm:$0xff]  ;;  %v374_v46 = vld [vmem:[#allocation5 + $0x8a0] sm:$0xff]  ;;  %v213_v19 = vld [vmem:[#allocation5 + $0x398] sm:$0xff] }
  0x89   :  { %743 = vmatprep.subr.mxu1 %v145_v21  ;;  %667 = vmatpush1.msra.mxu0 %v398_v22  ;;  %v371_v48 = vld [vmem:[#allocation5 + $0x888] sm:$0xff]  ;;  %v370_v50 = vld [vmem:[#allocation5 + $0x880] sm:$0xff]  ;;  %v212_v21 = vld [vmem:[#allocation5 + $0x390] sm:$0xff] }
  0x8a   :  { %744 = vmatpush1.msra.mxu1 %v144_v23  ;;  %668 = vmatprep.subr.mxu0 %v395_v24  ;;  %v367_v52 = vld [vmem:[#allocation5 + $0x868] sm:$0xff]  ;;  %v366_v54 = vld [vmem:[#allocation5 + $0x860] sm:$0xff]  ;;  %v209_v23 = vld [vmem:[#allocation5 + $0x378] sm:$0xff] }
  0x8b   :  { %745 = vmatprep.subr.mxu1 %v141_v25  ;;  %669 = vmatpush1.msra.mxu0 %v394_v26  ;;  %v363_v56 = vld [vmem:[#allocation5 + $0x848] sm:$0xff]  ;;  %v362_v58 = vld [vmem:[#allocation5 + $0x840] sm:$0xff]  ;;  %v208_v25 = vld [vmem:[#allocation5 + $0x370] sm:$0xff] }
  0x8c   :  { %746 = vmatpush1.msra.mxu1 %v140_v27  ;;  %670 = vmatprep.subr.mxu0 %v391_v28  ;;  %v359_v60 = vld [vmem:[#allocation5 + $0x828] sm:$0xff]  ;;  %v358_v62 = vld [vmem:[#allocation5 + $0x820] sm:$0xff]  ;;  %v205_v27 = vld [vmem:[#allocation5 + $0x358] sm:$0xff] }
  0x8d   :  { %747 = vmatprep.subr.mxu1 %v137_v29  ;;  %671 = vmatpush1.msra.mxu0 %v390_v30  ;;  %v355_v2 = vld [vmem:[#allocation5 + $0x808] sm:$0xff]  ;;  %v354_v4 = vld [vmem:[#allocation5 + $0x800] sm:$0xff]  ;;  %v204_v29 = vld [vmem:[#allocation5 + $0x350] sm:$0xff] }
  0x8e   :  { %748 = vmatpush1.msra.mxu1 %v136_v31  ;;  %672 = vmatprep.subr.mxu0 %v387_v32  ;;  %v479_v6 = vld [vmem:[#allocation5 + $0xbe8] sm:$0xff]  ;;  %v478_v8 = vld [vmem:[#allocation5 + $0xbe0] sm:$0xff]  ;;  %v201_v31 = vld [vmem:[#allocation5 + $0x338] sm:$0xff] }
  0x8f   :  { %749 = vmatprep.subr.mxu1 %v133_v33  ;;  %673 = vmatpush1.msra.mxu0 %v386_v34  ;;  %v475_v10 = vld [vmem:[#allocation5 + $0xbc8] sm:$0xff]  ;;  %v474_v12 = vld [vmem:[#allocation5 + $0xbc0] sm:$0xff]  ;;  %v200_v33 = vld [vmem:[#allocation5 + $0x330] sm:$0xff] }
  0x90   :  { %750 = vmatpush1.msra.mxu1 %v132_v35  ;;  %674 = vmatprep.subr.mxu0 %v383_v36  ;;  %v471_v14 = vld [vmem:[#allocation5 + $0xba8] sm:$0xff]  ;;  %v470_v16 = vld [vmem:[#allocation5 + $0xba0] sm:$0xff]  ;;  %v197_v35 = vld [vmem:[#allocation5 + $0x318] sm:$0xff] }
  0x91   :  { %751 = vmatprep.subr.mxu1 %v129_v37  ;;  %675 = vmatpush1.msra.mxu0 %v382_v38  ;;  %v467_v18 = vld [vmem:[#allocation5 + $0xb88] sm:$0xff]  ;;  %v466_v20 = vld [vmem:[#allocation5 + $0xb80] sm:$0xff]  ;;  %v196_v37 = vld [vmem:[#allocation5 + $0x310] sm:$0xff] }
  0x92   :  { %752 = vmatpush1.msra.mxu1 %v128_v39  ;;  %676 = vmatprep.subr.mxu0 %v379_v40  ;;  %v463_v22 = vld [vmem:[#allocation5 + $0xb68] sm:$0xff]  ;;  %v462_v24 = vld [vmem:[#allocation5 + $0xb60] sm:$0xff]  ;;  %v193_v39 = vld [vmem:[#allocation5 + $0x2f8] sm:$0xff] }
  0x93   :  { %753 = vmatprep.subr.mxu1 %v125_v41  ;;  %677 = vmatpush1.msra.mxu0 %v378_v42  ;;  %v459_v26 = vld [vmem:[#allocation5 + $0xb48] sm:$0xff]  ;;  %v458_v28 = vld [vmem:[#allocation5 + $0xb40] sm:$0xff]  ;;  %v192_v41 = vld [vmem:[#allocation5 + $0x2f0] sm:$0xff] }
  0x94   :  { %754 = vmatpush1.msra.mxu1 %v124_v43  ;;  %678 = vmatprep.subr.mxu0 %v375_v44  ;;  %v455_v30 = vld [vmem:[#allocation5 + $0xb28] sm:$0xff]  ;;  %v454_v32 = vld [vmem:[#allocation5 + $0xb20] sm:$0xff]  ;;  %v189_v43 = vld [vmem:[#allocation5 + $0x2d8] sm:$0xff] }
  0x95   :  { %755 = vmatprep.subr.mxu1 %v121_v45  ;;  %679 = vmatpush1.msra.mxu0 %v374_v46  ;;  %v451_v34 = vld [vmem:[#allocation5 + $0xb08] sm:$0xff]  ;;  %v450_v36 = vld [vmem:[#allocation5 + $0xb00] sm:$0xff]  ;;  %v188_v45 = vld [vmem:[#allocation5 + $0x2d0] sm:$0xff] }
  0x96   :  { %756 = vmatpush1.msra.mxu1 %v120_v47  ;;  %680 = vmatprep.subr.mxu0 %v371_v48  ;;  %v447_v38 = vld [vmem:[#allocation5 + $0xae8] sm:$0xff]  ;;  %v446_v40 = vld [vmem:[#allocation5 + $0xae0] sm:$0xff]  ;;  %v185_v47 = vld [vmem:[#allocation5 + $0x2b8] sm:$0xff] }
  0x97   :  { %757 = vmatprep.subr.mxu1 %v117_v49  ;;  %681 = vmatpush1.msra.mxu0 %v370_v50  ;;  %v443_v42 = vld [vmem:[#allocation5 + $0xac8] sm:$0xff]  ;;  %v442_v44 = vld [vmem:[#allocation5 + $0xac0] sm:$0xff]  ;;  %v184_v49 = vld [vmem:[#allocation5 + $0x2b0] sm:$0xff] }
  0x98   :  { %758 = vmatpush1.msra.mxu1 %v116_v51  ;;  %682 = vmatprep.subr.mxu0 %v367_v52  ;;  %v439_v46 = vld [vmem:[#allocation5 + $0xaa8] sm:$0xff]  ;;  %v438_v48 = vld [vmem:[#allocation5 + $0xaa0] sm:$0xff]  ;;  %v181_v51 = vld [vmem:[#allocation5 + $0x298] sm:$0xff] }
  0x99   :  { %759 = vmatprep.subr.mxu1 %v113_v53  ;;  %683 = vmatpush1.msra.mxu0 %v366_v54  ;;  %v435_v50 = vld [vmem:[#allocation5 + $0xa88] sm:$0xff]  ;;  %v434_v52 = vld [vmem:[#allocation5 + $0xa80] sm:$0xff]  ;;  %v180_v53 = vld [vmem:[#allocation5 + $0x290] sm:$0xff] }
  0x9a   :  { %760 = vmatpush1.msra.mxu1 %v112_v55  ;;  %684 = vmatprep.subr.mxu0 %v363_v56  ;;  %v431_v54 = vld [vmem:[#allocation5 + $0xa68] sm:$0xff]  ;;  %v177_v55 = vld [vmem:[#allocation5 + $0x278] sm:$0xff]  ;;  %v430_v56 = vld [vmem:[#allocation5 + $0xa60] sm:$0xff] }
  0x9b   :  { %761 = vmatprep.subr.mxu1 %v109_v57  ;;  %685 = vmatpush1.msra.mxu0 %v362_v58  ;;  %v176_v57 = vld [vmem:[#allocation5 + $0x270] sm:$0xff]  ;;  %v1778_v58 = vld [vmem:[#allocation2 + $0x38] sm:$0xff] }
  0x9c   :  { %762 = vmatpush1.msra.mxu1 %v108_v59  ;;  %686 = vmatprep.subr.mxu0 %v359_v60  ;;  %v427_v59 = vld [vmem:[#allocation5 + $0xa48] sm:$0xff]  ;;  %v173_v60 = vld [vmem:[#allocation5 + $0x258] sm:$0xff] }
  0x9d   :  { %763 = vmatprep.subr.mxu1 %v105_v61  ;;  %687 = vmatpush1.msra.mxu0 %v358_v62  ;;  %v1780_v61 = vld [vmem:[#allocation2 + $0x30] sm:$0xff]  ;;  %v426_v62 = vld [vmem:[#allocation5 + $0xa40] sm:$0xff] }
  0x9e   :  { %764 = vmatpush1.msra.mxu1 %v104_v0  ;;  %688 = vmatprep.subr.mxu0 %v355_v2  ;;  %v172_v0 = vld [vmem:[#allocation5 + $0x250] sm:$0xff]  ;;  %v1783_v2 = vld [vmem:[#allocation2 + $0x48] sm:$0xff] }
  0x9f   :  { %765 = vmatprep.subr.mxu1 %v101_v3  ;;  %689 = vmatpush1.msra.mxu0 %v354_v4  ;;  %v423_v3 = vld [vmem:[#allocation5 + $0xa28] sm:$0xff]  ;;  %v169_v4 = vld [vmem:[#allocation5 + $0x238] sm:$0xff] }
  0xa0   :  { %766 = vmatpush1.msra.mxu1 %v100_v5  ;;  %690 = vmatprep.subr.mxu0 %v479_v6  ;;  %v1786_v5 = vld [vmem:[#allocation2 + $0x40] sm:$0xff] }
  0xa1   :  { %767 = vmatprep.subr.mxu1 %v225_v7  ;;  %691 = vmatpush2.msra.mxu0 %v478_v8  ;;  %v422_v6 = vld [vmem:[#allocation5 + $0xa20] sm:$0xff]  ;;  %v168_v7 = vld [vmem:[#allocation5 + $0x230] sm:$0xff]  ;;  %v419_v8 = vld [vmem:[#allocation5 + $0xa08] sm:$0xff] }
  0xa2   :  { %768 = vmatpush2.msra.mxu1 %v224_v9  ;;  %692 = vmatprep.subr.mxu0 %v475_v10  ;;  %v165_v9 = vld [vmem:[#allocation5 + $0x218] sm:$0xff]  ;;  %v418_v10 = vld [vmem:[#allocation5 + $0xa00] sm:$0xff] }
  0xa3   :  { %769 = vmatprep.subr.mxu1 %v221_v11  ;;  %693 = vmatpush2.msra.mxu0 %v474_v12  ;;  %v1790_v11 = vld [vmem:[#allocation2 + $0x28] sm:$0xff]  ;;  %v164_v12 = vld [vmem:[#allocation5 + $0x210] sm:$0xff] }
  0xa4   :  { %770 = vmatpush2.msra.mxu1 %v220_v13  ;;  %694 = vmatprep.subr.mxu0 %v471_v14  ;;  %v1792_v13 = vld [vmem:[#allocation2 + $0x20] sm:$0xff]  ;;  %v289_v14 = vld [vmem:[#allocation5 + $0x5f8] sm:$0xff] }
  0xa5   :  { %771 = vmatprep.subr.mxu1 %v217_v15  ;;  %695 = vmatpush2.msra.mxu0 %v470_v16  ;;  %v417_v15 = vld [vmem:[#allocation5 + $0x9f8] sm:$0xff]  ;;  %v288_v16 = vld [vmem:[#allocation5 + $0x5f0] sm:$0xff] }
  0xa6   :  { %772 = vmatpush2.msra.mxu1 %v216_v17  ;;  %696 = vmatprep.subr.mxu0 %v467_v18  ;;  %v416_v17 = vld [vmem:[#allocation5 + $0x9f0] sm:$0xff]  ;;  %v285_v18 = vld [vmem:[#allocation5 + $0x5d8] sm:$0xff] }
  0xa7   :  { %773 = vmatprep.subr.mxu1 %v213_v19  ;;  %697 = vmatpush2.msra.mxu0 %v466_v20  ;;  %v413_v19 = vld [vmem:[#allocation5 + $0x9d8] sm:$0xff] }
  0xa8   :  { %774 = vmatpush2.msra.mxu1 %v212_v21  ;;  %698 = vmatprep.subr.mxu0 %v463_v22  ;;  %v1798_v20 = vld [vmem:[#allocation2 + $0x58] sm:$0xff]  ;;  %v284_v21 = vld [vmem:[#allocation5 + $0x5d0] sm:$0xff] }
  0xa9   :  { %775 = vmatprep.subr.mxu1 %v209_v23  ;;  %699 = vmatpush2.msra.mxu0 %v462_v24  ;;  %v412_v22 = vld [vmem:[#allocation5 + $0x9d0] sm:$0xff]  ;;  %v281_v24 = vld [vmem:[#allocation5 + $0x5b8] sm:$0xff] }
  0xaa   :  { %776 = vmatpush2.msra.mxu1 %v208_v25  ;;  %700 = vmatprep.subr.mxu0 %v459_v26  ;;  %v1800_v23 = vld [vmem:[#allocation2 + $0x50] sm:$0xff]  ;;  %v409_v25 = vld [vmem:[#allocation5 + $0x9b8] sm:$0xff] }
  0xab   :  { %777 = vmatprep.subr.mxu1 %v205_v27  ;;  %701 = vmatpush2.msra.mxu0 %v458_v28  ;;  %v408_v26 = vld [vmem:[#allocation5 + $0x9b0] sm:$0xff]  ;;  %v405_v27 = vld [vmem:[#allocation5 + $0x998] sm:$0xff] }
  0xac   :  { %778 = vmatpush2.msra.mxu1 %v204_v29  ;;  %702 = vmatprep.subr.mxu0 %v455_v30  ;;  %v276_v28 = vld [vmem:[#allocation5 + $0x590] sm:$0xff]  ;;  %v273_v30 = vld [vmem:[#allocation5 + $0x578] sm:$0xff] }
  0xad   :  { %779 = vmatprep.subr.mxu1 %v201_v31  ;;  %703 = vmatpush2.msra.mxu0 %v454_v32  ;;  %v404_v29 = vld [vmem:[#allocation5 + $0x990] sm:$0xff]  ;;  %v401_v31 = vld [vmem:[#allocation5 + $0x978] sm:$0xff] }
  0xae   :  { %780 = vmatpush2.msra.mxu1 %v200_v33  ;;  %704 = vmatprep.subr.mxu0 %v451_v34  ;;  %v272_v32 = vld [vmem:[#allocation5 + $0x570] sm:$0xff]  ;;  %v269_v34 = vld [vmem:[#allocation5 + $0x558] sm:$0xff] }
  0xaf   :  { %781 = vmatprep.subr.mxu1 %v197_v35  ;;  %705 = vmatpush2.msra.mxu0 %v450_v36  ;;  %v400_v33 = vld [vmem:[#allocation5 + $0x970] sm:$0xff]  ;;  %v397_v35 = vld [vmem:[#allocation5 + $0x958] sm:$0xff] }
  0xb0   :  { %782 = vmatpush2.msra.mxu1 %v196_v37  ;;  %706 = vmatprep.subr.mxu0 %v447_v38  ;;  %v268_v36 = vld [vmem:[#allocation5 + $0x550] sm:$0xff]  ;;  %v265_v38 = vld [vmem:[#allocation5 + $0x538] sm:$0xff] }
  0xb1   :  { %783 = vmatprep.subr.mxu1 %v193_v39  ;;  %707 = vmatpush2.msra.mxu0 %v446_v40  ;;  %v396_v37 = vld [vmem:[#allocation5 + $0x950] sm:$0xff]  ;;  %v393_v39 = vld [vmem:[#allocation5 + $0x938] sm:$0xff] }
  0xb2   :  { %784 = vmatpush2.msra.mxu1 %v192_v41  ;;  %708 = vmatprep.subr.mxu0 %v443_v42  ;;  %v264_v40 = vld [vmem:[#allocation5 + $0x530] sm:$0xff]  ;;  %v261_v42 = vld [vmem:[#allocation5 + $0x518] sm:$0xff] }
  0xb3   :  { %785 = vmatprep.subr.mxu1 %v189_v43  ;;  %709 = vmatpush2.msra.mxu0 %v442_v44  ;;  %v392_v41 = vld [vmem:[#allocation5 + $0x930] sm:$0xff]  ;;  %v389_v43 = vld [vmem:[#allocation5 + $0x918] sm:$0xff] }
  0xb4   :  { %786 = vmatpush2.msra.mxu1 %v188_v45  ;;  %710 = vmatprep.subr.mxu0 %v439_v46  ;;  %v260_v44 = vld [vmem:[#allocation5 + $0x510] sm:$0xff]  ;;  %v257_v46 = vld [vmem:[#allocation5 + $0x4f8] sm:$0xff] }
  0xb5   :  { %787 = vmatprep.subr.mxu1 %v185_v47  ;;  %711 = vmatpush2.msra.mxu0 %v438_v48  ;;  %v388_v45 = vld [vmem:[#allocation5 + $0x910] sm:$0xff]  ;;  %v385_v47 = vld [vmem:[#allocation5 + $0x8f8] sm:$0xff] }
  0xb6   :  { %788 = vmatpush2.msra.mxu1 %v184_v49  ;;  %712 = vmatprep.subr.mxu0 %v435_v50  ;;  %v256_v48 = vld [vmem:[#allocation5 + $0x4f0] sm:$0xff]  ;;  %v253_v50 = vld [vmem:[#allocation5 + $0x4d8] sm:$0xff] }
  0xb7   :  { %789 = vmatprep.subr.mxu1 %v181_v51  ;;  %713 = vmatpush2.msra.mxu0 %v434_v52  ;;  %v384_v49 = vld [vmem:[#allocation5 + $0x8f0] sm:$0xff]  ;;  %v381_v51 = vld [vmem:[#allocation5 + $0x8d8] sm:$0xff] }
  0xb8   :  { %790 = vmatpush2.msra.mxu1 %v180_v53  ;;  %714 = vmatprep.subr.mxu0 %v431_v54  ;;  %v252_v52 = vld [vmem:[#allocation5 + $0x4d0] sm:$0xff]  ;;  %v249_v54 = vld [vmem:[#allocation5 + $0x4b8] sm:$0xff] }
  0xb9   :  { %791 = vmatprep.subr.mxu1 %v177_v55  ;;  %715 = vmatpush2.msra.mxu0 %v430_v56  ;;  %v380_v53 = vld [vmem:[#allocation5 + $0x8d0] sm:$0xff]  ;;  %v377_v55 = vld [vmem:[#allocation5 + $0x8b8] sm:$0xff] }
  0xba   :  { %792 = vmatpush2.msra.mxu1 %v176_v57  ;;  %574 = vmatprep.mubr.f32.mxu0 %v1778_v58  ;;  %v248_v56 = vld [vmem:[#allocation5 + $0x4b0] sm:$0xff] }
  0xbb   :  { %716 = vmatprep.subr.mxu0 %v427_v59  ;;  %793 = vmatprep.subr.mxu1 %v173_v60  ;;  %v376_v57 = vld [vmem:[#allocation5 + $0x8b0] sm:$0xff]  ;;  %v245_v59 = vld [vmem:[#allocation5 + $0x498] sm:$0xff] }
  0xbc   :  { %575 = vmatmul.mubr.f32.gmra.mxu0 %v1780_v61  ;;  %794 = vmatpush2.msra.mxu1 %v172_v0  ;;  %v373_v60 = vld [vmem:[#allocation5 + $0x898] sm:$0xff]  ;;  %v372_v0 = vld [vmem:[#allocation5 + $0x890] sm:$0xff] }
  0xbd   :  { %717 = vmatpush2.msra.mxu0 %v426_v62  ;;  %651 = vmatprep.mubr.f32.mxu1 %v1783_v2  ;;  %v244_v62 = vld [vmem:[#allocation5 + $0x490] sm:$0xff] }
  0xbe   :  { %718 = vmatprep.subr.mxu0 %v423_v3  ;;  %795 = vmatprep.subr.mxu1 %v169_v4  ;;  %v241_v3 = vld [vmem:[#allocation5 + $0x478] sm:$0xff] }
  0xbf   :  { %652 = vmatmul.mubr.f32.gmra.mxu1 %v1786_v5  ;;  %719 = vmatpush2.msra.mxu0 %v422_v6  ;;  %v369_v4 = vld [vmem:[#allocation5 + $0x878] sm:$0xff]  ;;  %v240_v6 = vld [vmem:[#allocation5 + $0x470] sm:$0xff] }
  0xc0   :  { %796 = vmatpush2.msra.mxu1 %v168_v7  ;;  %720 = vmatprep.subr.mxu0 %v419_v8  ;;  %v368_v7 = vld [vmem:[#allocation5 + $0x870] sm:$0xff]  ;;  %v237_v8 = vld [vmem:[#allocation5 + $0x458] sm:$0xff] }
  0xc1   :  { %797 = vmatprep.subr.mxu1 %v165_v9  ;;  %721 = vmatpush2.msra.mxu0 %v418_v10  ;;  %v365_v9 = vld [vmem:[#allocation5 + $0x858] sm:$0xff]  ;;  %v236_v10 = vld [vmem:[#allocation5 + $0x450] sm:$0xff] }
  0xc2   :  { %722 = vmatprep.mubr.f32.mxu0 %v1790_v11  ;;  %798 = vmatpush2.msra.mxu1 %v164_v12  ;;  %v364_v12 = vld [vmem:[#allocation5 + $0x850] sm:$0xff] }
  0xc3   :  { %723 = vmatmul.mubr.f32.vlgmr.msra.gmra.mxu0 %v1792_v13  ;;  %799 = vmatprep.mubr.f32.mxu1 %v1772_v63  ;;  %v280_v63 = vld [vmem:[#allocation5 + $0x5b0] sm:$0xff] }
  0xc4   :  { %812 = vmatprep.subr.mxu0 %v289_v14  ;;  %889 = vmatprep.subr.mxu1 %v417_v15  ;;  %v233_v14 = vld [vmem:[#allocation5 + $0x438] sm:$0xff] }
  0xc5   :  { %800 = vmatmul.mubr.f32.vlgmr.msra.gmra.mxu1 %v1774_v1  ;;  %813 = vmatpush1.msra.mxu0 %v288_v16  ;;  %v277_v1 = vld [vmem:[#allocation5 + $0x598] sm:$0xff]  ;;  %v232_v16 = vld [vmem:[#allocation5 + $0x430] sm:$0xff] }
  0xc6   :  { %890 = vmatpush1.msra.mxu1 %v416_v17  ;;  %814 = vmatprep.subr.mxu0 %v285_v18  ;;  %v361_v15 = vld [vmem:[#allocation5 + $0x838] sm:$0xff]  ;;  %v360_v17 = vld [vmem:[#allocation5 + $0x830] sm:$0xff] }
  0xc7   :  { %891 = vmatprep.subr.mxu1 %v413_v19  ;;  %728 = vmatprep.mubr.f32.mxu0 %v1798_v20  ;;  %v229_v18 = vld [vmem:[#allocation5 + $0x418] sm:$0xff] }
  0xc8   :  { %815 = vmatpush1.msra.mxu0 %v284_v21  ;;  %892 = vmatpush1.msra.mxu1 %v412_v22  ;;  %v357_v19 = vld [vmem:[#allocation5 + $0x818] sm:$0xff]  ;;  %v228_v21 = vld [vmem:[#allocation5 + $0x410] sm:$0xff] }
  0xc9   :  { %729 = vmatmul.mubr.f32.gmra.mxu0 %v1800_v23  ;;  %816 = vmatprep.subr.mxu0 %v281_v24  ;;  %v356_v22 = vld [vmem:[#allocation5 + $0x810] sm:$0xff]  ;;  %v353_v24 = vld [vmem:[#allocation5 + $0x7f8] sm:$0xff] }
  0xca   :  { %893 = vmatprep.subr.mxu1 %v409_v25  ;;  %817 = vmatpush1.msra.mxu0 %v280_v63  ;;  %v481_v25 = vld [vmem:[#allocation5 + $0xbf8] sm:$0xff]  ;;  %v352_v63 = vld [vmem:[#allocation5 + $0x7f0] sm:$0xff] }
  0xcb   :  { %894 = vmatpush1.msra.mxu1 %v408_v26  ;;  %818 = vmatprep.subr.mxu0 %v277_v1  ;;  %v480_v26 = vld [vmem:[#allocation5 + $0xbf0] sm:$0xff]  ;;  %v349_v1 = vld [vmem:[#allocation5 + $0x7d8] sm:$0xff] }
  0xcc   :  { %895 = vmatprep.subr.mxu1 %v405_v27  ;;  %819 = vmatpush1.msra.mxu0 %v276_v28  ;;  %v477_v27 = vld [vmem:[#allocation5 + $0xbd8] sm:$0xff]  ;;  %v348_v28 = vld [vmem:[#allocation5 + $0x7d0] sm:$0xff] }
  0xcd   :  { %896 = vmatpush1.msra.mxu1 %v404_v29  ;;  %820 = vmatprep.subr.mxu0 %v273_v30  ;;  %v476_v29 = vld [vmem:[#allocation5 + $0xbd0] sm:$0xff]  ;;  %v345_v30 = vld [vmem:[#allocation5 + $0x7b8] sm:$0xff] }
  0xce   :  { %897 = vmatprep.subr.mxu1 %v401_v31  ;;  %821 = vmatpush1.msra.mxu0 %v272_v32  ;;  %v473_v31 = vld [vmem:[#allocation5 + $0xbb8] sm:$0xff]  ;;  %v344_v32 = vld [vmem:[#allocation5 + $0x7b0] sm:$0xff] }
  0xcf   :  { %898 = vmatpush1.msra.mxu1 %v400_v33  ;;  %822 = vmatprep.subr.mxu0 %v269_v34  ;;  %v472_v33 = vld [vmem:[#allocation5 + $0xbb0] sm:$0xff]  ;;  %v341_v34 = vld [vmem:[#allocation5 + $0x798] sm:$0xff] }
  0xd0   :  { %899 = vmatprep.subr.mxu1 %v397_v35  ;;  %823 = vmatpush1.msra.mxu0 %v268_v36  ;;  %v469_v35 = vld [vmem:[#allocation5 + $0xb98] sm:$0xff]  ;;  %v340_v36 = vld [vmem:[#allocation5 + $0x790] sm:$0xff] }
  0xd1   :  { %900 = vmatpush1.msra.mxu1 %v396_v37  ;;  %824 = vmatprep.subr.mxu0 %v265_v38  ;;  %v468_v37 = vld [vmem:[#allocation5 + $0xb90] sm:$0xff]  ;;  %v337_v38 = vld [vmem:[#allocation5 + $0x778] sm:$0xff] }
  0xd2   :  { %901 = vmatprep.subr.mxu1 %v393_v39  ;;  %825 = vmatpush1.msra.mxu0 %v264_v40  ;;  %v465_v39 = vld [vmem:[#allocation5 + $0xb78] sm:$0xff]  ;;  %v336_v40 = vld [vmem:[#allocation5 + $0x770] sm:$0xff] }
  0xd3   :  { %902 = vmatpush1.msra.mxu1 %v392_v41  ;;  %826 = vmatprep.subr.mxu0 %v261_v42  ;;  %v464_v41 = vld [vmem:[#allocation5 + $0xb70] sm:$0xff]  ;;  %v333_v42 = vld [vmem:[#allocation5 + $0x758] sm:$0xff] }
  0xd4   :  { %903 = vmatprep.subr.mxu1 %v389_v43  ;;  %827 = vmatpush1.msra.mxu0 %v260_v44  ;;  %v461_v43 = vld [vmem:[#allocation5 + $0xb58] sm:$0xff]  ;;  %v332_v44 = vld [vmem:[#allocation5 + $0x750] sm:$0xff] }
  0xd5   :  { %904 = vmatpush1.msra.mxu1 %v388_v45  ;;  %828 = vmatprep.subr.mxu0 %v257_v46  ;;  %v460_v45 = vld [vmem:[#allocation5 + $0xb50] sm:$0xff]  ;;  %v329_v46 = vld [vmem:[#allocation5 + $0x738] sm:$0xff] }
  0xd6   :  { %905 = vmatprep.subr.mxu1 %v385_v47  ;;  %829 = vmatpush1.msra.mxu0 %v256_v48  ;;  %v457_v47 = vld [vmem:[#allocation5 + $0xb38] sm:$0xff]  ;;  %v328_v48 = vld [vmem:[#allocation5 + $0x730] sm:$0xff] }
  0xd7   :  { %906 = vmatpush1.msra.mxu1 %v384_v49  ;;  %830 = vmatprep.subr.mxu0 %v253_v50  ;;  %v456_v49 = vld [vmem:[#allocation5 + $0xb30] sm:$0xff]  ;;  %v325_v50 = vld [vmem:[#allocation5 + $0x718] sm:$0xff] }
  0xd8   :  { %907 = vmatprep.subr.mxu1 %v381_v51  ;;  %831 = vmatpush1.msra.mxu0 %v252_v52  ;;  %v453_v51 = vld [vmem:[#allocation5 + $0xb18] sm:$0xff]  ;;  %v324_v52 = vld [vmem:[#allocation5 + $0x710] sm:$0xff] }
  0xd9   :  { %908 = vmatpush1.msra.mxu1 %v380_v53  ;;  %832 = vmatprep.subr.mxu0 %v249_v54  ;;  %v452_v53 = vld [vmem:[#allocation5 + $0xb10] sm:$0xff]  ;;  %v321_v54 = vld [vmem:[#allocation5 + $0x6f8] sm:$0xff] }
  0xda   :  { %909 = vmatprep.subr.mxu1 %v377_v55  ;;  %833 = vmatpush1.msra.mxu0 %v248_v56  ;;  %v449_v55 = vld [vmem:[#allocation5 + $0xaf8] sm:$0xff]  ;;  %v320_v56 = vld [vmem:[#allocation5 + $0x6f0] sm:$0xff] }
  0xdb   :  { %910 = vmatpush1.msra.mxu1 %v376_v57  ;;  %834 = vmatprep.subr.mxu0 %v245_v59  ;;  %v448_v57 = vld [vmem:[#allocation5 + $0xaf0] sm:$0xff]  ;;  %v317_v59 = vld [vmem:[#allocation5 + $0x6d8] sm:$0xff] }
  0xdc   :  { %911 = vmatprep.subr.mxu1 %v373_v60  ;;  %835 = vmatpush1.msra.mxu0 %v244_v62  ;;  %v445_v60 = vld [vmem:[#allocation5 + $0xad8] sm:$0xff]  ;;  %v316_v62 = vld [vmem:[#allocation5 + $0x6d0] sm:$0xff] }
  0xdd   :  { %912 = vmatpush1.msra.mxu1 %v372_v0  ;;  %836 = vmatprep.subr.mxu0 %v241_v3  ;;  %v444_v0 = vld [vmem:[#allocation5 + $0xad0] sm:$0xff]  ;;  %v313_v3 = vld [vmem:[#allocation5 + $0x6b8] sm:$0xff] }
  0xde   :  { %913 = vmatprep.subr.mxu1 %v369_v4  ;;  %837 = vmatpush1.msra.mxu0 %v240_v6  ;;  %v441_v4 = vld [vmem:[#allocation5 + $0xab8] sm:$0xff]  ;;  %v312_v6 = vld [vmem:[#allocation5 + $0x6b0] sm:$0xff] }
  0xdf   :  { %914 = vmatpush1.msra.mxu1 %v368_v7  ;;  %838 = vmatprep.subr.mxu0 %v237_v8  ;;  %v440_v7 = vld [vmem:[#allocation5 + $0xab0] sm:$0xff]  ;;  %v309_v8 = vld [vmem:[#allocation5 + $0x698] sm:$0xff] }
  0xe0   :  { %915 = vmatprep.subr.mxu1 %v365_v9  ;;  %839 = vmatpush1.msra.mxu0 %v236_v10  ;;  %v437_v9 = vld [vmem:[#allocation5 + $0xa98] sm:$0xff]  ;;  %v308_v10 = vld [vmem:[#allocation5 + $0x690] sm:$0xff] }
  0xe1   :  { %916 = vmatpush1.msra.mxu1 %v364_v12  ;;  %840 = vmatprep.subr.mxu0 %v233_v14  ;;  %v436_v12 = vld [vmem:[#allocation5 + $0xa90] sm:$0xff]  ;;  %v305_v14 = vld [vmem:[#allocation5 + $0x678] sm:$0xff] }
  0xe2   :  { %917 = vmatprep.subr.mxu1 %v361_v15  ;;  %841 = vmatpush1.msra.mxu0 %v232_v16  ;;  %v433_v15 = vld [vmem:[#allocation5 + $0xa78] sm:$0xff]  ;;  %v304_v16 = vld [vmem:[#allocation5 + $0x670] sm:$0xff] }
  0xe3   :  { %918 = vmatpush1.msra.mxu1 %v360_v17  ;;  %842 = vmatprep.subr.mxu0 %v229_v18  ;;  %v432_v17 = vld [vmem:[#allocation5 + $0xa70] sm:$0xff]  ;;  %v301_v18 = vld [vmem:[#allocation5 + $0x658] sm:$0xff] }
  0xe4   :  { %919 = vmatprep.subr.mxu1 %v357_v19  ;;  %843 = vmatpush1.msra.mxu0 %v228_v21  ;;  %v429_v19 = vld [vmem:[#allocation5 + $0xa58] sm:$0xff]  ;;  %v300_v21 = vld [vmem:[#allocation5 + $0x650] sm:$0xff] }
  0xe5   :  { %920 = vmatpush1.msra.mxu1 %v356_v22  ;;  %844 = vmatprep.subr.mxu0 %v353_v24  ;;  %v428_v22 = vld [vmem:[#allocation5 + $0xa50] sm:$0xff]  ;;  %v297_v24 = vld [vmem:[#allocation5 + $0x638] sm:$0xff] }
  0xe6   :  { %921 = vmatprep.subr.mxu1 %v481_v25  ;;  %845 = vmatpush2.msra.mxu0 %v352_v63  ;;  %v425_v25 = vld [vmem:[#allocation5 + $0xa38] sm:$0xff]  ;;  %v296_v63 = vld [vmem:[#allocation5 + $0x630] sm:$0xff] }
  0xe7   :  { %922 = vmatpush2.msra.mxu1 %v480_v26  ;;  %846 = vmatprep.subr.mxu0 %v349_v1  ;;  %v424_v26 = vld [vmem:[#allocation5 + $0xa30] sm:$0xff]  ;;  %v293_v1 = vld [vmem:[#allocation5 + $0x618] sm:$0xff] }
  0xe8   :  { %923 = vmatprep.subr.mxu1 %v477_v27  ;;  %847 = vmatpush2.msra.mxu0 %v348_v28  ;;  %v421_v27 = vld [vmem:[#allocation5 + $0xa18] sm:$0xff]  ;;  %v292_v28 = vld [vmem:[#allocation5 + $0x610] sm:$0xff] }
  0xe9   :  { %924 = vmatpush2.msra.mxu1 %v476_v29  ;;  %848 = vmatprep.subr.mxu0 %v345_v30  ;;  %v420_v29 = vld [vmem:[#allocation5 + $0xa10] sm:$0xff]  ;;  %v1578_v30 = vld [vmem:[#allocation2 + $0x18] sm:$0xff] }
  0xea   :  { %925 = vmatprep.subr.mxu1 %v473_v31  ;;  %849 = vmatpush2.msra.mxu0 %v344_v32  ;;  %v1579_v31 = vld [vmem:[#allocation2 + $0x10] sm:$0xff] }
  0xeb   :  { %926 = vmatpush2.msra.mxu1 %v472_v33  ;;  %850 = vmatprep.subr.mxu0 %v341_v34  ;;  %v1049_v32 = vld [vmem:[%s2092_s3 + $0x70] sm:$0xff]  ;;  %v1046_v33 = vld [vmem:[%s2092_s3 + $0x58] sm:$0xff] }
  0xec   :  { %927 = vmatprep.subr.mxu1 %v469_v35  ;;  %851 = vmatpush2.msra.mxu0 %v340_v36  ;;  %v1061_v34 = vld [vmem:[%s2092_s3 + $0xd0] sm:$0xff]  ;;  %v1060_v36 = vld [vmem:[%s2092_s3 + $0xc8] sm:$0xff] }
  0xed   :  { %928 = vmatpush2.msra.mxu1 %v468_v37  ;;  %852 = vmatprep.subr.mxu0 %v337_v38  ;;  %v1045_v35 = vld [vmem:[%s2092_s3 + $0x50] sm:$0xff]  ;;  %v1044_v37 = vld [vmem:[%s2092_s3 + $0x48] sm:$0xff]  ;;  %v1059_v38 = vld [vmem:[%s2092_s3 + $0xc0] sm:$0xff] }
  0xee   :  { %929 = vmatprep.subr.mxu1 %v465_v39  ;;  %853 = vmatpush2.msra.mxu0 %v336_v40  ;;  %v1043_v39 = vld [vmem:[%s2092_s3 + $0x40] sm:$0xff]  ;;  %v1058_v40 = vld [vmem:[%s2092_s3 + $0xb8] sm:$0xff] }
  0xef   :  { %930 = vmatpush2.msra.mxu1 %v464_v41  ;;  %854 = vmatprep.subr.mxu0 %v333_v42  ;;  %v1042_v41 = vld [vmem:[%s2092_s3 + $0x38] sm:$0xff]  ;;  %v1057_v42 = vld [vmem:[%s2092_s3 + $0xb0] sm:$0xff] }
  0xf0   :  { %931 = vmatprep.subr.mxu1 %v461_v43  ;;  %855 = vmatpush2.msra.mxu0 %v332_v44  ;;  %v1041_v43 = vld [vmem:[%s2092_s3 + $0x30] sm:$0xff]  ;;  %v1056_v44 = vld [vmem:[%s2092_s3 + $0xa8] sm:$0xff] }
  0xf1   :  { %932 = vmatpush2.msra.mxu1 %v460_v45  ;;  %856 = vmatprep.subr.mxu0 %v329_v46  ;;  %v1040_v45 = vld [vmem:[%s2092_s3 + $0x28] sm:$0xff]  ;;  %v1055_v46 = vld [vmem:[%s2092_s3 + $0xa0] sm:$0xff] }
  0xf2   :  { %933 = vmatprep.subr.mxu1 %v457_v47  ;;  %857 = vmatpush2.msra.mxu0 %v328_v48  ;;  %v1039_v47 = vld [vmem:[%s2092_s3 + $0x20] sm:$0xff]  ;;  %v1054_v48 = vld [vmem:[%s2092_s3 + $0x98] sm:$0xff] }
  0xf3   :  { %934 = vmatpush2.msra.mxu1 %v456_v49  ;;  %858 = vmatprep.subr.mxu0 %v325_v50  ;;  %v1038_v49 = vld [vmem:[%s2092_s3 + $0x18] sm:$0xff]  ;;  %v1053_v50 = vld [vmem:[%s2092_s3 + $0x90] sm:$0xff] }
  0xf4   :  { %935 = vmatprep.subr.mxu1 %v453_v51  ;;  %859 = vmatpush2.msra.mxu0 %v324_v52  ;;  %v1037_v51 = vld [vmem:[%s2092_s3 + $0x10] sm:$0xff]  ;;  %v1052_v52 = vld [vmem:[%s2092_s3 + $0x88] sm:$0xff] }
  0xf5   :  { %936 = vmatpush2.msra.mxu1 %v452_v53  ;;  %860 = vmatprep.subr.mxu0 %v321_v54  ;;  %v1036_v53 = vld [vmem:[%s2092_s3 + $0x8] sm:$0xff]  ;;  %v1051_v54 = vld [vmem:[%s2092_s3 + $0x80] sm:$0xff] }
  0xf6   :  { %937 = vmatprep.subr.mxu1 %v449_v55  ;;  %861 = vmatpush2.msra.mxu0 %v320_v56  ;;  %v1035_v55 = vld [vmem:[%s2092_s3] sm:$0xff]  ;;  %v1098_v56 = vld [vmem:[%s2092_s3 + $0x1f8] sm:$0xff] }
  0xf7   :  { %938 = vmatpush2.msra.mxu1 %v448_v57  ;;  %862 = vmatprep.subr.mxu0 %v317_v59  ;;  %v1082_v57 = vld [vmem:[%s2092_s3 + $0x178] sm:$0xff]  ;;  %v1097_v59 = vld [vmem:[%s2092_s3 + $0x1f0] sm:$0xff] }
  0xf8   :  { %939 = vmatprep.subr.mxu1 %v445_v60  ;;  %863 = vmatpush2.msra.mxu0 %v316_v62  ;;  %v1081_v60 = vld [vmem:[%s2092_s3 + $0x170] sm:$0xff]  ;;  %v1096_v62 = vld [vmem:[%s2092_s3 + $0x1e8] sm:$0xff] }
  0xf9   :  { %940 = vmatpush2.msra.mxu1 %v444_v0  ;;  %864 = vmatprep.subr.mxu0 %v313_v3  ;;  %v1080_v0 = vld [vmem:[%s2092_s3 + $0x168] sm:$0xff]  ;;  %v1095_v3 = vld [vmem:[%s2092_s3 + $0x1e0] sm:$0xff] }
  0xfa   :  { %941 = vmatprep.subr.mxu1 %v441_v4  ;;  %865 = vmatpush2.msra.mxu0 %v312_v6  ;;  %v1079_v4 = vld [vmem:[%s2092_s3 + $0x160] sm:$0xff]  ;;  %v1094_v6 = vld [vmem:[%s2092_s3 + $0x1d8] sm:$0xff] }
  0xfb   :  { %942 = vmatpush2.msra.mxu1 %v440_v7  ;;  %866 = vmatprep.subr.mxu0 %v309_v8  ;;  %v1078_v7 = vld [vmem:[%s2092_s3 + $0x158] sm:$0xff]  ;;  %v1093_v8 = vld [vmem:[%s2092_s3 + $0x1d0] sm:$0xff] }
  0xfc   :  { %943 = vmatprep.subr.mxu1 %v437_v9  ;;  %867 = vmatpush2.msra.mxu0 %v308_v10  ;;  %v1077_v9 = vld [vmem:[%s2092_s3 + $0x150] sm:$0xff]  ;;  %v1092_v10 = vld [vmem:[%s2092_s3 + $0x1c8] sm:$0xff] }
  0xfd   :  { %944 = vmatpush2.msra.mxu1 %v436_v12  ;;  %868 = vmatprep.subr.mxu0 %v305_v14  ;;  %v1076_v12 = vld [vmem:[%s2092_s3 + $0x148] sm:$0xff]  ;;  %v1091_v14 = vld [vmem:[%s2092_s3 + $0x1c0] sm:$0xff] }
  0xfe   :  { %945 = vmatprep.subr.mxu1 %v433_v15  ;;  %869 = vmatpush2.msra.mxu0 %v304_v16  ;;  %v1075_v15 = vld [vmem:[%s2092_s3 + $0x140] sm:$0xff]  ;;  %v1090_v16 = vld [vmem:[%s2092_s3 + $0x1b8] sm:$0xff] }
  0xff   :  { %946 = vmatpush2.msra.mxu1 %v432_v17  ;;  %870 = vmatprep.subr.mxu0 %v301_v18  ;;  %v1074_v17 = vld [vmem:[%s2092_s3 + $0x138] sm:$0xff]  ;;  %v1089_v18 = vld [vmem:[%s2092_s3 + $0x1b0] sm:$0xff] }
 0x100   :  { %947 = vmatprep.subr.mxu1 %v429_v19  ;;  %805 = vmatprep.mubr.f32.mxu1 %v1778_v58  ;;  %v1066_v58 = vld [vmem:[%s2092_s3 + $0xf8] sm:$0xff]  ;;  %v1073_v19 = vld [vmem:[%s2092_s3 + $0x130] sm:$0xff] }
 0x101   :  { %871 = vmatpush2.msra.mxu0 %v300_v21  ;;  %948 = vmatpush2.msra.mxu1 %v428_v22  ;;  %v1088_v21 = vld [vmem:[%s2092_s3 + $0x1a8] sm:$0xff] }
 0x102   :  { %872 = vmatprep.subr.mxu0 %v297_v24  ;;  %806 = vmatmul.mubr.f32.gmra.mxu1 %v1780_v61  ;;  %v1050_v61 = vld [vmem:[%s2092_s3 + $0x78] sm:$0xff]  ;;  %v1072_v22 = vld [vmem:[%s2092_s3 + $0x128] sm:$0xff]  ;;  %v1087_v24 = vld [vmem:[%s2092_s3 + $0x1a0] sm:$0xff] }
 0x103   :  { %949 = vmatprep.subr.mxu1 %v425_v25  ;;  %873 = vmatpush2.msra.mxu0 %v296_v63  ;;  %v1071_v25 = vld [vmem:[%s2092_s3 + $0x120] sm:$0xff]  ;;  %v1086_v63 = vld [vmem:[%s2092_s3 + $0x198] sm:$0xff] }
 0x104   :  { %950 = vmatpush2.msra.mxu1 %v424_v26  ;;  %874 = vmatprep.subr.mxu0 %v293_v1  ;;  %v1070_v26 = vld [vmem:[%s2092_s3 + $0x118] sm:$0xff]  ;;  %v1085_v1 = vld [vmem:[%s2092_s3 + $0x190] sm:$0xff] }
 0x105   :  { %951 = vmatprep.subr.mxu1 %v421_v27  ;;  %875 = vmatpush2.msra.mxu0 %v292_v28  ;;  %v1069_v27 = vld [vmem:[%s2092_s3 + $0x110] sm:$0xff]  ;;  %v1084_v28 = vld [vmem:[%s2092_s3 + $0x188] sm:$0xff] }
 0x106   :  { %876 = vmatprep.mubr.f32.mxu0 %v1578_v30  ;;  %952 = vmatpush2.msra.mxu1 %v420_v29  ;;  %v1068_v29 = vld [vmem:[%s2092_s3 + $0x108] sm:$0xff]  ;;  %v1083_v30 = vld [vmem:[%s2092_s3 + $0x180] sm:$0xff] }
 0x107   :  { %953 = vmatprep.mubr.f32.mxu1 %v1790_v11  ;;  %877 = vmatmul.mubr.f32.vlgmr.msra.gmra.mxu0 %v1579_v31  ;;  %v1065_v11 = vld [vmem:[%s2092_s3 + $0xf0] sm:$0xff]  ;;  %v484_v31 = vlaneseq }
 0x108   :  { %954 = vmatmul.mubr.f32.vlgmr.msra.gmra.mxu1 %v1792_v13  ;;  %882 = vmatprep.mubr.f32.mxu0 %v1783_v2  ;;  %v1064_v2 = vld [vmem:[%s2092_s3 + $0xe8] sm:$0xff] }
 0x109   :  { %959 = vmatprep.mubr.f32.mxu1 %v1798_v20  ;;  %1495 = vmatprep.subr.mxu0 %v1066_v58  ;;  %v1048_v13 = vld [vmem:[%s2092_s3 + $0x68] sm:$0xff]  ;;  %v1063_v20 = vld [vmem:[%s2092_s3 + $0xe0] sm:$0xff] }
 0x10a   :  { %1496 = vmatpush3.msra.mxu0 %v1050_v61  ;;  %1530 = vmatprep.subr.mxu1 %v1098_v56  ;;  %v1067_v58 = vld [vmem:[%s2092_s3 + $0x100] sm:$0xff]  ;;  %v2004_v61 = vshrl.u32 %v484_v31, 7 }
 0x10b   :  { %883 = vmatmul.mubr.f32.gmra.mxu0 %v1786_v5  ;;  %1497 = vmatprep.subr.mxu0 %v1065_v11  ;;  %v1047_v5 = vld [vmem:[%s2092_s3 + $0x60] sm:$0xff] }
 0x10c   :  { %960 = vmatmul.mubr.f32.gmra.mxu1 %v1800_v23  ;;  %1498 = vmatpush3.msra.mxu0 %v1049_v32  ;;  %v1062_v23 = vld [vmem:[%s2092_s3 + $0xd8] sm:$0xff]  ;;  %v2007_v32 = vsub.s32 0, %v2004_v61  ;;  %s1718_s3 = smov [#allocation11]  }
 0x10d   :  { %1499 = vmatprep.subr.mxu0 %v1064_v2  ;;  %1531 = vmatpush3.msra.mxu1 %v1082_v57  ;;  %s1479_s18 = sshll.u32 %s1718_s3, 4  ;;  %s1480_s18 = int_to_ptr.vmem [resolvable:$true] %s1479_s18 }
 0x10e   :  { %1500 = vmatpush3.msra.mxu0 %v1048_v13  ;;  %1532 = vmatprep.subr.mxu1 %v1097_v59  ;;  %v2009_v13 = vld [vmem:[#allocation7] sm:$0xf]  ;;  %s1680_s4 = scalar_lea.vmem %s1480_s18, 1024  ;;  %p1685_p12 = scmp.lt.s32.totalorder %s1480_s18, %s1480_s18 }
 0x10f   :  { %1501 = vmatprep.subr.mxu0 %v1063_v20  ;;  %1533 = vmatpush3.msra.mxu1 %v1081_v60  ;;  %v2012_v20 = vsub.s32 1, %v2004_v61  ;;  %p1681_p11 = scmp.ne.s32.totalorder %s1480_s18, %s1680_s4  ;;  %p1686_p13 = scmp.lt.s32.totalorder %s1680_s4, %s1680_s4 }
 0x110   :  { %1502 = vmatpush3.msra.mxu0 %v1047_v5  ;;  %1534 = vmatprep.subr.mxu1 %v1096_v62 }
 0x111   :  { %1503 = vmatprep.subr.mxu0 %v1062_v23  ;;  %1535 = vmatpush3.msra.mxu1 %v1080_v0  ;;  %p1687_p0 = por %p1686_p13, %p1685_p12 }
 0x112   :  { %1504 = vmatpush3.msra.mxu0 %v1046_v33  ;;  %1536 = vmatprep.subr.mxu1 %v1095_v3  ;;  %v487_v33 = vrot.slane %v2009_v13, %v2007_v32 }
 0x113   :  { %1505 = vmatprep.subr.mxu0 %v1061_v34  ;;  %1537 = vmatpush3.msra.mxu1 %v1079_v4  ;;  %v491_v34 = vrot.slane %v2009_v13, %v2012_v20  ;;  %p1688_p1 = pnand %p1687_p0, %p1681_p11 }
 0x114   :  { %1506 = vmatpush3.msra.mxu0 %v1045_v35  ;;  %1538 = vmatprep.subr.mxu1 %v1094_v6 }
 0x115   :  { %1507 = vmatprep.subr.mxu0 %v1060_v36  ;;  %1539 = vmatpush3.msra.mxu1 %v1078_v7 }
 0x116   :  { %1508 = vmatpush3.msra.mxu0 %v1044_v37  ;;  %1540 = vmatprep.subr.mxu1 %v1093_v8 }
 0x117   :  { %1509 = vmatprep.subr.mxu0 %v1059_v38  ;;  %1541 = vmatpush3.msra.mxu1 %v1077_v9 }
 0x118   :  { %1510 = vmatpush3.msra.mxu0 %v1043_v39  ;;  %1542 = vmatprep.subr.mxu1 %v1092_v10 }
 0x119   :  { %1511 = vmatprep.subr.mxu0 %v1058_v40  ;;  %1543 = vmatpush3.msra.mxu1 %v1076_v12 }
 0x11a   :  { %1512 = vmatpush3.msra.mxu0 %v1042_v41  ;;  %1544 = vmatprep.subr.mxu1 %v1091_v14 }
 0x11b   :  { %1513 = vmatprep.subr.mxu0 %v1057_v42  ;;  %1545 = vmatpush3.msra.mxu1 %v1075_v15 }
 0x11c   :  { %1514 = vmatpush3.msra.mxu0 %v1041_v43  ;;  %1546 = vmatprep.subr.mxu1 %v1090_v16 }
 0x11d   :  { %1515 = vmatprep.subr.mxu0 %v1056_v44  ;;  %1547 = vmatpush3.msra.mxu1 %v1074_v17 }
 0x11e   :  { %1516 = vmatpush3.msra.mxu0 %v1040_v45  ;;  %1548 = vmatprep.subr.mxu1 %v1089_v18 }
 0x11f   :  { %1517 = vmatprep.subr.mxu0 %v1055_v46  ;;  %1549 = vmatpush3.msra.mxu1 %v1073_v19 }
 0x120   :  { %1518 = vmatpush3.msra.mxu0 %v1039_v47  ;;  %1550 = vmatprep.subr.mxu1 %v1088_v21 }
 0x121   :  { %1519 = vmatprep.subr.mxu0 %v1054_v48  ;;  %1551 = vmatpush3.msra.mxu1 %v1072_v22 }
 0x122   :  { %1520 = vmatpush3.msra.mxu0 %v1038_v49  ;;  %1552 = vmatprep.subr.mxu1 %v1087_v24 }
 0x123   :  { %1521 = vmatprep.subr.mxu0 %v1053_v50  ;;  %1553 = vmatpush3.msra.mxu1 %v1071_v25 }
 0x124   :  { %1522 = vmatpush3.msra.mxu0 %v1037_v51  ;;  %1554 = vmatprep.subr.mxu1 %v1086_v63 }
 0x125   :  { %1523 = vmatprep.subr.mxu0 %v1052_v52  ;;  %1555 = vmatpush3.msra.mxu1 %v1070_v26 }
 0x126   :  { %1524 = vmatpush3.msra.mxu0 %v1036_v53  ;;  %1556 = vmatprep.subr.mxu1 %v1085_v1 }
 0x127   :  { %1525 = vmatprep.subr.mxu0 %v1051_v54  ;;  %1557 = vmatpush3.msra.mxu1 %v1069_v27 }
 0x128   :  { %1526 = vmatpush3.msra.mxu0 %v1035_v55  ;;  %1558 = vmatprep.subr.mxu1 %v1084_v28 }
 0x129   :  { %1559 = vmatpush3.msra.mxu1 %v1068_v29 }
 0x12a   :  { %1560 = vmatprep.subr.mxu1 %v1083_v30 }
 0x12b   :  { %1561 = vmatpush3.msra.mxu1 %v1067_v58 }
 0x13f   :  { %v570_v11 = vpop.f32.mrf.mxu0 }
 0x140   :  { %v571_v37 = vadd.f32 %v570_v11, %v487_v33 }
 0x141   :  { %v572_v2 = vpop.f32.mrf.mxu0  ;;  %v647_v23 = vpop.f32.mrf.mxu1 }
 0x142   :  { %v573_v38 = vadd.f32 %v572_v2, %v491_v34  ;;  %v648_v43 = vadd.f32 %v647_v23, %v571_v37  ;;  %v494_v2 = vsub.s32 2, %v2004_v61 }
 0x143   :  { %v649_v36 = vpop.f32.mrf.mxu1 }
 0x144   :  { %v650_v45 = vadd.f32 %v649_v36, %v573_v38 }
 0x17c   :  { %v576_v5 = vpop.f32.mrf.mxu0 }
 0x17d   :  { %v577_v41 = vadd.f32 %v576_v5, %v487_v33  ;;  %v498_v5 = vsub.s32 3, %v2004_v61  ;;  %v495_v33 = vrot.slane %v2009_v13, %v494_v2 }
 0x17e   :  { %v578_v35 = vpop.f32.mrf.mxu0 }
 0x17f   :  { %v653_v39 = vpop.f32.mrf.mxu1  ;;  %v579_v44 = vadd.f32 %v578_v35, %v491_v34  ;;  %v499_v35 = vrot.slane %v2009_v13, %v498_v5 }
 0x180   :  { %v654_v47 = vadd.f32 %v653_v39, %v577_v41 }
 0x181   :  { %v655_v46 = vpop.f32.mrf.mxu1 }
 0x182   :  { %v656_v51 = vadd.f32 %v655_v46, %v579_v44 }
 0x183   :  { %v724_v40 = vpop.f32.mrf.mxu0 }
 0x184   :  { %v2018_v48 = vadd.f32 %v724_v40, %v648_v43 }
 0x185   :  { %v726_v42 = vpop.f32.mrf.mxu0  ;;  %v801_v11 = vpop.f32.mrf.mxu1 }
 0x186   :  { %v2020_v49 = vadd.f32 %v726_v42, %v650_v45  ;;  %v994_v54 = vmul.f32 %v2018_v48, %v2018_v48  ;;  %v802_v37 = vadd.f32 %v801_v11, %v495_v33 }
 0x187   :  { %v803_v23 = vpop.f32.mrf.mxu1 }
 0x188   :  { %v995_v59 = vmul.f32 %v2020_v49, %v2020_v49  ;;  %v804_v40 = vadd.f32 %v803_v23, %v499_v35 }
 0x189   :  { %v730_v50 = vpop.f32.mrf.mxu0 }
 0x18a   :  { %v2022_v52 = vadd.f32 %v730_v50, %v654_v47 }
 0x18b   :  { %v732_v53 = vpop.f32.mrf.mxu0 }
 0x18c   :  { %v966_v55 = vadd.f32 %v2022_v52, %v2018_v48  ;;  %v998_v56 = vmul.f32 %v2022_v52, %v2022_v52  ;;  %v2030_v57 = vadd.f32 %v732_v53, %v656_v51 }
 0x18e   :  { %v967_v60 = vrot.slane %v966_v55, 4  ;;  %v1002_v62 = vadd.f32 %v998_v56, %v994_v54  ;;  %v973_v0 = vadd.f32 %v2030_v57, %v2020_v49  ;;  %v999_v3 = vmul.f32 %v2030_v57, %v2030_v57 }
 0x190   :  { %v968_v4 = vadd.f32 %v967_v60, %v966_v55  ;;  %v1003_v6 = vrot.slane %v1002_v62, 4  ;;  %v974_v7 = vrot.slane %v973_v0, 4  ;;  %v1009_v8 = vadd.f32 %v999_v3, %v995_v59 }
 0x192   :  { %v969_v9 = vrot.slane %v968_v4, 2  ;;  %v1004_v10 = vadd.f32 %v1003_v6, %v1002_v62  ;;  %v975_v12 = vadd.f32 %v974_v7, %v973_v0  ;;  %v1010_v14 = vrot.slane %v1009_v8, 4 }
 0x194   :  { %v1005_v15 = vrot.slane %v1004_v10, 2  ;;  %v976_v16 = vrot.slane %v975_v12, 2  ;;  %v1011_v17 = vadd.f32 %v1010_v14, %v1009_v8  ;;  %v970_v18 = vadd.f32 %v969_v9, %v968_v4 }
 0x196   :  { %v1006_v19 = vadd.f32 %v1005_v15, %v1004_v10  ;;  %v977_v21 = vadd.f32 %v976_v16, %v975_v12  ;;  %v1012_v22 = vrot.slane %v1011_v17, 2  ;;  %v971_v26 = vrot.slane %v970_v18, 1 }
 0x198   :  { %v978_v24 = vrot.slane %v977_v21, 1  ;;  %v1013_v25 = vadd.f32 %v1012_v22, %v1011_v17  ;;  %v1007_v63 = vrot.slane %v1006_v19, 1  ;;  %v972_v30 = vadd.f32 %v971_v26, %v970_v18 }
 0x19a   :  { %v1014_v1 = vrot.slane %v1013_v25, 1  ;;  %v1008_v27 = vadd.f32 %v1007_v63, %v1006_v19  ;;  %v979_v28 = vadd.f32 %v978_v24, %v977_v21 }
 0x19c   :  { %v1015_v29 = vadd.f32 %v1014_v1, %v1013_v25  ;;  %v1031_v31 = vsel %vm1030_vm0, %v972_v30, %v1008_v27 }
 0x19e   :  { %v1032_v58 = vsel %vm1030_vm0, %v979_v28, %v1015_v29 }
 0x19f   :  { %1163 = vmatprep.mubr.f32.mxu0 %v1032_v58 }
 0x1a0   :  { %1164 = vmatmul.mubr.f32.vlgmr.msra.gmra.mxu0 %v1031_v31 }
 0x1c2   :  { %v807_v34 = vpop.f32.mrf.mxu1 }
 0x1c3   :  { %v808_v44 = vadd.f32 %v807_v34, %v495_v33  ;;  %v1261_v33 = vld [vmem:[#allocation8 + $0x8] sm:$0xff]  ;;  %v1263_v34 = vld [vmem:[#allocation8 + $0x18] sm:$0xff] }
 0x1c4   :  { %v809_v36 = vpop.f32.mrf.mxu1  ;;  %1298 = vmatprep.subr.mxu0 %v1261_v33  ;;  %1369 = vmatprep.subr.mxu1 %v1263_v34 }
 0x1c5   :  { %v810_v50 = vadd.f32 %v809_v36, %v499_v35  ;;  %v1260_v35 = vld [vmem:[#allocation8] sm:$0xff]  ;;  %v1262_v36 = vld [vmem:[#allocation8 + $0x10] sm:$0xff] }
 0x1c6   :  { %1299 = vmatpush1.msra.mxu0 %v1260_v35 }
 0x1c7   :  { %v878_v38 = vpop.f32.mrf.mxu0 }
 0x1c8   :  { %v955_v39 = vpop.f32.mrf.mxu1  ;;  %v879_v41 = vadd.f32 %v878_v38, %v802_v37  ;;  %v1717_v37 = vmov 0.0  }
 0x1c9   :  { %v880_v42 = vpop.f32.mrf.mxu0  ;;  %1332 = vmatprep.mubr.f32.mxu0 %v1717_v37 }
 0x1ca   :  { %v957_v43 = vpop.f32.mrf.mxu1  ;;  %v881_v45 = vadd.f32 %v880_v42, %v804_v40  ;;  %v2044_v61 = vadd.f32 %v955_v39, %v879_v41 }
 0x1cb   :  { %v884_v46 = vpop.f32.mrf.mxu0 }
 0x1cc   :  { %v961_v47 = vpop.f32.mrf.mxu1  ;;  %v885_v51 = vadd.f32 %v884_v46, %v808_v44  ;;  %v2046_v53 = vadd.f32 %v957_v43, %v881_v45  ;;  %v996_v59 = vmul.f32 %v2044_v61, %v2044_v61 }
 0x1cd   :  { %v886_v54 = vpop.f32.mrf.mxu0 }
 0x1ce   :  { %v2048_v13 = vadd.f32 %v961_v47, %v885_v51  ;;  %v887_v55 = vadd.f32 %v886_v54, %v810_v50  ;;  %v963_v56 = vpop.f32.mrf.mxu1  ;;  %v997_v3 = vmul.f32 %v2046_v53, %v2046_v53 }
 0x1d0   :  { %v980_v60 = vadd.f32 %v2048_v13, %v2044_v61  ;;  %v1000_v62 = vmul.f32 %v2048_v13, %v2048_v13  ;;  %v2056_v0 = vadd.f32 %v963_v56, %v887_v55  ;;  %v1246_v56 = vld [vmem:[#allocation10] sm:$0x1] }
 0x1d2   :  { %v981_v4 = vrot.slane %v980_v60, 4  ;;  %v1016_v6 = vadd.f32 %v1000_v62, %v996_v59  ;;  %v987_v7 = vadd.f32 %v2056_v0, %v2046_v53  ;;  %v1001_v8 = vmul.f32 %v2056_v0, %v2056_v0  ;;  %v1253_v62 = vld [vmem:[#allocation10 + $0x1] sm:$0x1] }
 0x1d4   :  { %v982_v9 = vadd.f32 %v981_v4, %v980_v60  ;;  %v1017_v10 = vrot.slane %v1016_v6, 4  ;;  %v988_v12 = vrot.slane %v987_v7, 4  ;;  %v1023_v14 = vadd.f32 %v1001_v8, %v997_v3 }
 0x1d6   :  { %v983_v15 = vrot.slane %v982_v9, 2  ;;  %v1018_v16 = vadd.f32 %v1017_v10, %v1016_v6  ;;  %v989_v17 = vadd.f32 %v988_v12, %v987_v7  ;;  %v1024_v18 = vrot.slane %v1023_v14, 4 }
 0x1d8   :  { %v1019_v19 = vrot.slane %v1018_v16, 2  ;;  %v990_v21 = vrot.slane %v989_v17, 2  ;;  %v1025_v22 = vadd.f32 %v1024_v18, %v1023_v14  ;;  %v984_v24 = vadd.f32 %v983_v15, %v982_v9 }
 0x1da   :  { %v1020_v25 = vadd.f32 %v1019_v19, %v1018_v16  ;;  %v991_v63 = vadd.f32 %v990_v21, %v989_v17  ;;  %v1026_v26 = vrot.slane %v1025_v22, 2  ;;  %v985_v29 = vrot.slane %v984_v24, 1 }
 0x1dc   :  { %v992_v1 = vrot.slane %v991_v63, 1  ;;  %v1027_v27 = vadd.f32 %v1026_v26, %v1025_v22  ;;  %v1021_v28 = vrot.slane %v1020_v25, 1  ;;  %v986_v2 = vadd.f32 %v985_v29, %v984_v24 }
 0x1de   :  { %v1028_v30 = vrot.slane %v1027_v27, 1  ;;  %v1022_v58 = vadd.f32 %v1021_v28, %v1020_v25  ;;  %v993_v31 = vadd.f32 %v992_v1, %v991_v63 }
 0x1e0   :  { %v1029_v11 = vadd.f32 %v1028_v30, %v1027_v27  ;;  %v1033_v23 = vsel %vm1030_vm0, %v986_v2, %v1022_v58 }
 0x1e2   :  { %v1034_v5 = vsel %vm1030_vm0, %v993_v31, %v1029_v11 }
 0x1e3   :  { %1233 = vmatprep.mubr.f32.mxu1 %v1034_v5 }
 0x1e4   :  { %1234 = vmatmul.mubr.f32.vlgmr.msra.gmra.mxu1 %v1033_v23 }
 0x1e5   :  { %1370 = vmatpush1.msra.mxu1 %v1262_v36  ;;  %1403 = vmatprep.mubr.f32.mxu1 %v1717_v37 }
 0x260   :  { %v1527_v38 = vpop.f32.mrf.mxu0 }
 0x262   :  { %v1528_v39 = vpop.f32.mrf.mxu0 }
 0x263   :  { %v1529_v42 = vadd.f32 %v1528_v39, %v1527_v38 }
 0x2a4   :  { %v1562_v40 = vpop.f32.mrf.mxu1 }
 0x2a6   :  { %v1563_v41 = vpop.f32.mrf.mxu1 }
 0x2a7   :  { %v1564_v43 = vadd.f32 %v1563_v41, %v1562_v40 }
 0x2a9   :  { %v1236_v44 = vadd.f32 %v1564_v43, %v1529_v42 }
 0x2ab   :  { %v1239_v45 = vmul.f32 0.0009765625, %v1236_v44 }
 0x2ad   :  { %v1240_v46 = vmul.f32 %v1239_v45, %v1239_v45 }
 0x2af   :  { %v1242_v47 = vrot.slane %v1240_v46, 7 }
 0x2b1   :  { %v1244_v50 = vsub.f32 %v1239_v45, %v1242_v47 }
 0x2b3   :  { %v1245_v51 = vmax.f32 %v1244_v50, 0.0 }
 0x2b5   :  { %v1247_v54 = vadd.f32 1e-05, %v1245_v51 }
 0x2b7   :  { %1576 = vrsqrt.f32 %v1247_v54 }
 0x2c4   :  { %v1577_v55 = vpop.eup %1576 }
 0x2c5   :  { %v1250_v59 = vrot.slane %v1577_v55, 1 }
 0x2c7   :  { %v1252_v60 = vmul.f32 %v1250_v59, %v1246_v56 }
 0x2c9   :  { %v1254_v3 = vmul.f32 %v1252_v60, %v1239_v45 }
 0x2cb   :  { %v1255_v4 = vsub.f32 %v1253_v62, %v1254_v3 }
 0x2cd   :  { %v1257_v6 = vrot.slane %v1255_v4, 7 }
 0x2cf   :  { %v1259_v7 = vsel %vm1030_vm0, %v1252_v60, %v1257_v6 }
 0x2d0   :  { %1493 = vmatmul.mubr.msk.f32.vlgmr.msra.gmra.mxu0 %vm1264_vm1, %v1259_v7  ;;  %1494 = vmatmul.mubr.msk.f32.vlgmr.msra.gmra.mxu1 %vm1264_vm1, %v1259_v7 }
 0x390   :  { %v1334_v8 = vpop.f32.mrf.mxu0  ;;  %v1405_v9 = vpop.f32.mrf.mxu1 }
 0x391   :  { %v1413_v10 = vrot.slane %v1334_v8, %v2007_v32  ;;  %v1421_v12 = vrot.slane %v1405_v9, %v2007_v32  ;;  %v1437_v14 = vrot.slane %v1334_v8, %v2012_v20  ;;  %v1445_v15 = vrot.slane %v1405_v9, %v2012_v20 }
 0x392   :  { %v1336_v16 = vpop.f32.mrf.mxu0  ;;  %v1407_v17 = vpop.f32.mrf.mxu1 }
 0x393   :  { %v1426_v18 = vmul.f32 %v1413_v10, %v2018_v48  ;;  %v1430_v19 = vmul.f32 %v1413_v10, %v2022_v52  ;;  %v1428_v21 = vmul.f32 %v1421_v12, %v2044_v61  ;;  %v1432_v22 = vmul.f32 %v1421_v12, %v2048_v13 }
 0x394   :  { %v1417_v24 = vrot.slane %v1336_v16, %v2007_v32  ;;  %v1441_v25 = vrot.slane %v1336_v16, %v2012_v20  ;;  %v1425_v63 = vrot.slane %v1407_v17, %v2007_v32  ;;  %v1449_v26 = vrot.slane %v1407_v17, %v2012_v20 }
 0x395   :  { %v1450_v1 = vadd.f32 %v1437_v14, %v1426_v18  ;;  %v1454_v27 = vadd.f32 %v1437_v14, %v1430_v19  ;;  %v1452_v28 = vadd.f32 %v1445_v15, %v1428_v21  ;;  %v1456_v29 = vadd.f32 %v1445_v15, %v1432_v22 }
 0x396   :  { %v1427_v48 = vmul.f32 %v1417_v24, %v2020_v49  ;;  %v1431_v52 = vmul.f32 %v1417_v24, %v2030_v57  ;;  %v1429_v61 = vmul.f32 %v1425_v63, %v2046_v53  ;;  %v1433_v13 = vmul.f32 %v1425_v63, %v2056_v0 }
 0x397   :  { %v1458_v30 = vmax.f32 %v1450_v1, 0.0  ;;  %v1462_v58 = vmax.f32 %v1454_v27, 0.0  ;;  %v1460_v31 = vmax.f32 %v1452_v28, 0.0  ;;  %v1464_v11 = vmax.f32 %v1456_v29, 0.0 }
 0x398   :  { %v1451_v32 = vadd.f32 %v1441_v25, %v1427_v48  ;;  %v1455_v20 = vadd.f32 %v1441_v25, %v1431_v52  ;;  %v1453_v2 = vadd.f32 %v1449_v26, %v1429_v61  ;;  %v1457_v5 = vadd.f32 %v1449_v26, %v1433_v13 }
 0x399   :  { %1466 = vst [vmem:[#allocation11] sm:$0xff] %v1458_v30  ;;  %1470 = vst [vmem:[#allocation11 + $0x20] sm:$0xff] %v1462_v58 }
 0x39a   :  { %1468 = vst [vmem:[#allocation11 + $0x10] sm:$0xff] %v1460_v31  ;;  %1472 = vst [vmem:[#allocation11 + $0x30] sm:$0xff] %v1464_v11  ;;  %v1459_v49 = vmax.f32 %v1451_v32, 0.0  ;;  %v1463_v57 = vmax.f32 %v1455_v20, 0.0  ;;  %v1461_v23 = vmax.f32 %v1453_v2, 0.0  ;;  %v1465_v53 = vmax.f32 %v1457_v5, 0.0 }
 0x39c   :  { %1467 = vst [vmem:[#allocation11 + $0x8] sm:$0xff] %v1459_v49  ;;  %1471 = vst [vmem:[#allocation11 + $0x28] sm:$0xff] %v1463_v57 }
 0x39d   :  { %1469 = vst [vmem:[#allocation11 + $0x18] sm:$0xff] %v1461_v23  ;;  %1473 = vst [vmem:[#allocation11 + $0x38] sm:$0xff] %v1465_v53 }
 0x39e   :  { %1691 = shalt.err (!%p1688_p1)
}
 0x39f   :  { %1485 = dma.vmem_to_hbm [thread:$0]  %s1480_s18, 1024, %s2095_s6, [#allocation4], %s1709_s24, %s1709_s24, %s1710_s25  }
 0x3a0   :  { %1706 = dma.done.wait [#allocation4], 1024  }
 0x3a1   :  { %1707 = vsyncadd [#allocation4], 4294966272 }
 0x3a2   :  { %1489 = vsyncpa [#allocation3], 1 }
 0x3a3   :  { %1490 = vsyncpa [#allocation6], 1 }
 0x3a4   :  { %1491 = vsyncpa [#allocation9], 1 }
 0x3a5   :  { %1492 = vsyncpa [#allocation4], 1 }

</bundles_post_ra>
